<compile_context>
chip_gen: v5e
topology: v5e:2x2
jax: 0.10.0
libtpu: 0.0.40
codegen_flags: <defaults>
</compile_context>

<pallas_src>
import functools
import numpy as np
import jax
import jax.numpy as jnp
from jax import lax
from jax.experimental import pallas as pl
from jax.experimental.pallas import tpu as pltpu

LN_EPS = 1e-5
NEG_INF = -1e30   # finite large negative: safe even if rows are ever padded


def _layernorm_f32(x, gamma, beta):
    mu = jnp.mean(x, axis=-1, keepdims=True)
    var = jnp.mean((x - mu) ** 2, axis=-1, keepdims=True)
    return (x - mu) * lax.rsqrt(var + LN_EPS) * gamma + beta


def block_kernel(x_ref,
                 ln1g_ref, ln1b_ref,
                 wqkv_ref,
                 wp_ref, bp_ref,
                 ln2g_ref, ln2b_ref,
                 w1_ref, b1_ref, w2_ref, b2_ref,
                 out_ref,
                 *, num_heads):
    Bb, T, C = x_ref.shape
    H = num_heads
    hs = C // H
    cdt = x_ref.dtype               # MXU operand dtype (follows the input dtype)
    scale = C ** (-0.5)             # NOTE: PyTorch source scales by full embed dim C,
                                    #       not head_size (kept for parity).

    x = x_ref[...].astype(jnp.float32)            # (Bb, T, C) f32 for LN / residuals
    x2d = x.reshape(Bb * T, C)

    # ---- ln1 ----
    xl1 = _layernorm_f32(x2d, ln1g_ref[0].astype(jnp.float32),
                         ln1b_ref[0].astype(jnp.float32))

    # ---- fused QKV projection: one lane-dense matmul ----
    qkv = jnp.dot(xl1.astype(cdt), wqkv_ref[...],
                  preferred_element_type=jnp.float32)          # (Bb*T, 3C) f32 acc
    qkv = qkv.reshape(Bb, T, 3 * C)

    # ---- causal additive mask, built once per grid step ----
    row = lax.broadcasted_iota(jnp.int32, (T, T), 0)
    col = lax.broadcasted_iota(jnp.int32, (T, T), 1)
    mask_add = jnp.where(col <= row, 0.0, NEG_INF).astype(jnp.float32)   # (T, T)

    # ---- attention: per-head scores/values, output projection folded per head
    #      (equivalent to concat + (C,C) proj, but with no lane-axis concat) ----
    sa2d = jnp.zeros((Bb * T, C), jnp.float32)
    for h in range(H):
        q = (qkv[:, :, h * hs:(h + 1) * hs] * scale).astype(cdt)          # (Bb,T,hs)
        k = qkv[:, :, C + h * hs:C + (h + 1) * hs].astype(cdt)            # (Bb,T,hs)
        v = qkv[:, :, 2 * C + h * hs:2 * C + (h + 1) * hs].astype(cdt)    # (Bb,T,hs)

        s = jnp.einsum('bqd,bkd->bqk', q, k,
                       preferred_element_type=jnp.float32)                # (Bb,T,T)
        s = s + mask_add
        s = s - jnp.max(s, axis=-1, keepdims=True)
        p = jnp.exp(s)
        p = p * pl.reciprocal(jnp.sum(p, axis=-1, keepdims=True), approx=True)

        o = jnp.einsum('bqk,bkd->bqd', p.astype(cdt), v,
                       preferred_element_type=jnp.float32)                # (Bb,T,hs)
        sa2d = sa2d + jnp.dot(o.reshape(Bb * T, hs).astype(cdt), wp_ref[h],
                              preferred_element_type=jnp.float32)
    sa2d = sa2d + bp_ref[0].astype(jnp.float32)

    # ---- residual 1 ----
    x1 = x2d + sa2d

    # ---- ln2 + feed-forward ----
    xl2 = _layernorm_f32(x1, ln2g_ref[0].astype(jnp.float32),
                         ln2b_ref[0].astype(jnp.float32))
    hmid = jnp.dot(xl2.astype(cdt), w1_ref[...],
                   preferred_element_type=jnp.float32) + b1_ref[0].astype(jnp.float32)
    hmid = jnp.maximum(hmid, 0.0)                                          # ReLU
    ff = jnp.dot(hmid.astype(cdt), w2_ref[...],
                 preferred_element_type=jnp.float32) + b2_ref[0].astype(jnp.float32)

    # ---- residual 2 ----
    out_ref[...] = (x1 + ff).reshape(Bb, T, C).astype(out_ref.dtype)


def transformer_block(x, params, *, num_heads, block_b=1):
    B, T, C = x.shape
    assert C % num_heads == 0 and B % block_b == 0
    hs = C // num_heads
    wdt = x.dtype   # keep matmul weights in the input dtype (bf16-friendly)

    # --- host-side (free) weight fusion ---
    # (H, C, hs) per-head weights -> (C, H*hs) with head-major columns (== torch.cat)
    def heads_to_cols(w):
        return jnp.transpose(w, (1, 0, 2)).reshape(C, num_heads * hs)

    wqkv = jnp.concatenate([heads_to_cols(params["wq"]),
                            heads_to_cols(params["wk"]),
                            heads_to_cols(params["wv"])], axis=1).astype(wdt)  # (C, 3C)
    wp_h = params["wp"].reshape(num_heads, hs, C).astype(wdt)                  # (H, hs, C)

    param_list = [
        params["ln1_g"].astype(jnp.float32), params["ln1_b"].astype(jnp.float32),
        wqkv,
        wp_h, params["bp"].astype(jnp.float32),
        params["ln2_g"].astype(jnp.float32), params["ln2_b"].astype(jnp.float32),
        params["w1"].astype(wdt), params["b1"].astype(jnp.float32),
        params["w2"].astype(wdt), params["b2"].astype(jnp.float32),
    ]

    def full_spec(a):
        nd = a.ndim
        return pl.BlockSpec(a.shape, lambda b, _nd=nd: (0,) * _nd)

    in_specs = ([pl.BlockSpec((block_b, T, C), lambda b: (b, 0, 0))]
                + [full_spec(p) for p in param_list])

    kernel = functools.partial(block_kernel, num_heads=num_heads)

    return pl.pallas_call(
        kernel,
        out_shape=jax.ShapeDtypeStruct((B, T, C), x.dtype),
        grid=(B // block_b,),
        in_specs=in_specs,
        out_specs=pl.BlockSpec((block_b, T, C), lambda b: (b, 0, 0)),
        compiler_params=pltpu.CompilerParams(
            dimension_semantics=("parallel",),        # batch steps shard across v7x's 2 TCs
            vmem_limit_bytes=64 * 1024 * 1024,        # explicit scoped-VMEM budget
        ),
    )(x, *param_list)


# ---------------- pure-JAX reference (for correctness check) ----------------
def reference_block(x, p):
    x = x.astype(jnp.float32)
    C = x.shape[-1]
    num_heads = p["wq"].shape[0]

    def ln(v, g, b):
        mu = jnp.mean(v, -1, keepdims=True)
        var = jnp.mean((v - mu) ** 2, -1, keepdims=True)
        return (v - mu) / jnp.sqrt(var + LN_EPS) * g + b

    xl = ln(x, p["ln1_g"][0], p["ln1_b"][0])
    T = x.shape[1]
    mask = jnp.tril(jnp.ones((T, T), bool))
    outs = []
    for h in range(num_heads):
        q = xl @ p["wq"][h]
        k = xl @ p["wk"][h]
        v = xl @ p["wv"][h]
        wei = (q @ jnp.swapaxes(k, -1, -2)) * C ** (-0.5)
        wei = jnp.where(mask, wei, -jnp.inf)
        wei = jax.nn.softmax(wei, -1)
        outs.append(wei @ v)
    sa = jnp.concatenate(outs, -1) @ p["wp"] + p["bp"][0]
    x1 = x + sa
    x2l = ln(x1, p["ln2_g"][0], p["ln2_b"][0])
    ff = jnp.maximum(x2l @ p["w1"] + p["b1"][0], 0.0) @ p["w2"] + p["b2"][0]
    return x1 + ff


if __name__ == "__main__":
    # Small shapes consistent with the module: (B, T, n_embd), lane-dense C (multiple of 128).
    B, T, C, num_heads = 2, 16, 128, 4
    hs = C // num_heads

    key = jax.random.PRNGKey(0)
    ks = jax.random.split(key, 16)

    def rnd(k, shape, scale=0.05):
        return (scale * jax.random.normal(k, shape)).astype(jnp.float32)

    params = {
        "ln1_g": (1.0 + 0.1 * jax.random.normal(ks[10], (1, C))).astype(jnp.float32),
        "ln1_b": rnd(ks[11], (1, C)),
        "wq": rnd(ks[0], (num_heads, C, hs)),
        "wk": rnd(ks[1], (num_heads, C, hs)),
        "wv": rnd(ks[2], (num_heads, C, hs)),
        "wp": rnd(ks[3], (C, C)),
        "bp": rnd(ks[4], (1, C)),
        "ln2_g": (1.0 + 0.1 * jax.random.normal(ks[12], (1, C))).astype(jnp.float32),
        "ln2_b": rnd(ks[13], (1, C)),
        "w1": rnd(ks[5], (C, 4 * C)),
        "b1": rnd(ks[6], (1, 4 * C)),
        "w2": rnd(ks[7], (4 * C, C)),
        "b2": rnd(ks[8], (1, C)),
    }

    x = jax.random.normal(ks[9], (B, T, C), jnp.float32)

    # block_b=1 -> grid=(2,) parallel steps (uses both v7x TensorCores); raise block_b
    # to amortize per-step overhead when B is large.
    out = transformer_block(x, params, num_heads=num_heads, block_b=1)
    out = jax.block_until_ready(out)

    ref = reference_block(x, params)
    # Tolerance accounts for approx-EUP reciprocal in the softmax denominator.
    np.testing.assert_allclose(np.asarray(out), np.asarray(ref), rtol=2e-3, atol=2e-3)

    print("KERNEL_OK")
</pallas_src>

<mosaic_0001>
module attributes {stable_mosaic.version = 11 : i64} {
  func.func @block_kernel(%arg0: i32, %arg1: memref<1x16x128xf32, #tpu.memory_space<vmem>>, %arg2: memref<1x128xf32, #tpu.memory_space<vmem>>, %arg3: memref<1x128xf32, #tpu.memory_space<vmem>>, %arg4: memref<128x384xf32, #tpu.memory_space<vmem>>, %arg5: memref<4x32x128xf32, #tpu.memory_space<vmem>>, %arg6: memref<1x128xf32, #tpu.memory_space<vmem>>, %arg7: memref<1x128xf32, #tpu.memory_space<vmem>>, %arg8: memref<1x128xf32, #tpu.memory_space<vmem>>, %arg9: memref<128x512xf32, #tpu.memory_space<vmem>>, %arg10: memref<1x512xf32, #tpu.memory_space<vmem>>, %arg11: memref<512x128xf32, #tpu.memory_space<vmem>>, %arg12: memref<1x128xf32, #tpu.memory_space<vmem>>, %arg13: memref<1x16x128xf32, #tpu.memory_space<vmem>>) attributes {dimension_semantics = [#tpu.dimension_semantics<parallel>], iteration_bounds = array<i64: 2>, scalar_prefetch = 0 : i64, scratch_operands = 0 : i64, tpu.core_type = #tpu.core_type<tc>, window_params = [{transform_indices = @transform_0, window_bounds = array<i64: 1, 16, 128>}, {pipeline_mode = #tpu.pipeline_mode<synchronous>, transform_indices = @transform_1, window_bounds = array<i64: 1, 128>}, {pipeline_mode = #tpu.pipeline_mode<synchronous>, transform_indices = @transform_2, window_bounds = array<i64: 1, 128>}, {pipeline_mode = #tpu.pipeline_mode<synchronous>, transform_indices = @transform_3, window_bounds = array<i64: 128, 384>}, {pipeline_mode = #tpu.pipeline_mode<synchronous>, transform_indices = @transform_4, window_bounds = array<i64: 4, 32, 128>}, {pipeline_mode = #tpu.pipeline_mode<synchronous>, transform_indices = @transform_5, window_bounds = array<i64: 1, 128>}, {pipeline_mode = #tpu.pipeline_mode<synchronous>, transform_indices = @transform_6, window_bounds = array<i64: 1, 128>}, {pipeline_mode = #tpu.pipeline_mode<synchronous>, transform_indices = @transform_7, window_bounds = array<i64: 1, 128>}, {pipeline_mode = #tpu.pipeline_mode<synchronous>, transform_indices = @transform_8, window_bounds = array<i64: 128, 512>}, {pipeline_mode = #tpu.pipeline_mode<synchronous>, transform_indices = @transform_9, window_bounds = array<i64: 1, 512>}, {pipeline_mode = #tpu.pipeline_mode<synchronous>, transform_indices = @transform_10, window_bounds = array<i64: 512, 128>}, {pipeline_mode = #tpu.pipeline_mode<synchronous>, transform_indices = @transform_11, window_bounds = array<i64: 1, 128>}, {transform_indices = @transform_12, window_bounds = array<i64: 1, 16, 128>}]} {
    %c0 = arith.constant 0 : index
    %c0_0 = arith.constant 0 : index
    %c0_1 = arith.constant 0 : index
    %0 = vector.load %arg1[%c0, %c0_0, %c0_1] : memref<1x16x128xf32, #tpu.memory_space<vmem>>, vector<1x16x128xf32>
    %1 = vector.shape_cast %0 : vector<1x16x128xf32> to vector<16x128xf32>
    %c0_2 = arith.constant 0 : index
    %c0_3 = arith.constant 0 : index
    %2 = vector.load %arg2[%c0_2, %c0_3] : memref<1x128xf32, #tpu.memory_space<vmem>>, vector<1x128xf32>
    %3 = vector.shape_cast %2 : vector<1x128xf32> to vector<128xf32>
    %c0_4 = arith.constant 0 : index
    %c0_5 = arith.constant 0 : index
    %4 = vector.load %arg3[%c0_4, %c0_5] : memref<1x128xf32, #tpu.memory_space<vmem>>, vector<1x128xf32>
    %5 = vector.shape_cast %4 : vector<1x128xf32> to vector<128xf32>
    %cst = arith.constant dense<0.000000e+00> : vector<16xf32>
    %6 = vector.multi_reduction <add>, %1, %cst [1] : vector<16x128xf32> to vector<16xf32>
    %7 = vector.shape_cast %6 : vector<16xf32> to vector<16x1xf32>
    %cst_6 = arith.constant 1.280000e+02 : f32
    %8 = vector.broadcast %cst_6 : f32 to vector<16x1xf32>
    %9 = arith.divf %7, %8 : vector<16x1xf32>
    %10 = vector.broadcast %9 : vector<16x1xf32> to vector<16x128xf32>
    %11 = arith.subf %1, %10 : vector<16x128xf32>
    %12 = arith.mulf %11, %11 : vector<16x128xf32>
    %cst_7 = arith.constant dense<0.000000e+00> : vector<16xf32>
    %13 = vector.multi_reduction <add>, %12, %cst_7 [1] : vector<16x128xf32> to vector<16xf32>
    %14 = vector.shape_cast %13 : vector<16xf32> to vector<16x1xf32>
    %cst_8 = arith.constant 1.280000e+02 : f32
    %15 = vector.broadcast %cst_8 : f32 to vector<16x1xf32>
    %16 = arith.divf %14, %15 : vector<16x1xf32>
    %17 = vector.broadcast %9 : vector<16x1xf32> to vector<16x128xf32>
    %18 = arith.subf %1, %17 : vector<16x128xf32>
    %cst_9 = arith.constant 9.99999974E-6 : f32
    %19 = vector.broadcast %cst_9 : f32 to vector<16x1xf32>
    %20 = arith.addf %16, %19 : vector<16x1xf32>
    %21 = math.rsqrt %20 : vector<16x1xf32>
    %22 = vector.broadcast %21 : vector<16x1xf32> to vector<16x128xf32>
    %23 = arith.mulf %18, %22 : vector<16x128xf32>
    %24 = vector.shape_cast %3 : vector<128xf32> to vector<1x128xf32>
    %25 = vector.broadcast %24 : vector<1x128xf32> to vector<16x128xf32>
    %26 = arith.mulf %23, %25 : vector<16x128xf32>
    %27 = vector.shape_cast %5 : vector<128xf32> to vector<1x128xf32>
    %28 = vector.broadcast %27 : vector<1x128xf32> to vector<16x128xf32>
    %29 = arith.addf %26, %28 : vector<16x128xf32>
    %c0_10 = arith.constant 0 : index
    %c0_11 = arith.constant 0 : index
    %30 = vector.load %arg4[%c0_10, %c0_11] : memref<128x384xf32, #tpu.memory_space<vmem>>, vector<128x384xf32>
    %cst_12 = arith.constant dense<0.000000e+00> : vector<16x384xf32>
    %31 = tpu.matmul %29, %30, %cst_12 {dimension_numbers = #tpu.dot_dimension_numbers<[1], [0], [0], [1], [0, 0, 1, 1], [], []>} : vector<16x128xf32>, vector<128x384xf32>, vector<16x384xf32> -> vector<16x384xf32>
    %32 = vector.shape_cast %31 : vector<16x384xf32> to vector<1x16x384xf32>
    %33 = tpu.iota {dimensions = array<i32: 0>} : vector<16x16xi32>
    %34 = tpu.iota {dimensions = array<i32: 1>} : vector<16x16xi32>
    %35 = arith.cmpi sle, %34, %33 : vector<16x16xi32>
    %cst_13 = arith.constant 0.000000e+00 : f32
    %cst_14 = arith.constant -1.000000e+30 : f32
    %36 = vector.broadcast %cst_13 : f32 to vector<16x16xf32>
    %37 = vector.broadcast %cst_14 : f32 to vector<16x16xf32>
    %38 = arith.select %35, %36, %37 : vector<16x16xi1>, vector<16x16xf32>
    %cst_15 = arith.constant 0.000000e+00 : f32
    %39 = vector.broadcast %cst_15 : f32 to vector<16x128xf32>
    %40 = vector.extract_strided_slice %32 {offsets = [0, 0, 0], sizes = [1, 16, 32], strides = [1, 1, 1]} : vector<1x16x384xf32> to vector<1x16x32xf32>
    %cst_16 = arith.constant 0.0883883461 : f32
    %41 = vector.broadcast %cst_16 : f32 to vector<1x16x32xf32>
    %42 = arith.mulf %40, %41 : vector<1x16x32xf32>
    %43 = vector.extract_strided_slice %32 {offsets = [0, 0, 128], sizes = [1, 16, 32], strides = [1, 1, 1]} : vector<1x16x384xf32> to vector<1x16x32xf32>
    %44 = vector.extract_strided_slice %32 {offsets = [0, 0, 256], sizes = [1, 16, 32], strides = [1, 1, 1]} : vector<1x16x384xf32> to vector<1x16x32xf32>
    "tpu.trace_start"() <{level = 10 : i32, message = "bqd,bkd->bqk"}> : () -> ()
    %cst_17 = arith.constant dense<0.000000e+00> : vector<1x16x16xf32>
    %45 = tpu.matmul %42, %43, %cst_17 {dimension_numbers = #tpu.dot_dimension_numbers<[2], [2], [1], [1], [0, 0, 0, 1, 1, 1], [0], [0]>} : vector<1x16x32xf32>, vector<1x16x32xf32>, vector<1x16x16xf32> -> vector<1x16x16xf32>
    "tpu.trace_stop"() : () -> ()
    %46 = vector.shape_cast %38 : vector<16x16xf32> to vector<1x16x16xf32>
    %47 = arith.addf %45, %46 : vector<1x16x16xf32>
    %cst_18 = arith.constant dense<0xFF800000> : vector<1x16xf32>
    %48 = vector.multi_reduction <maximumf>, %47, %cst_18 [2] : vector<1x16x16xf32> to vector<1x16xf32>
    %49 = vector.shape_cast %48 : vector<1x16xf32> to vector<1x16x1xf32>
    %50 = vector.broadcast %49 : vector<1x16x1xf32> to vector<1x16x16xf32>
    %51 = arith.subf %47, %50 : vector<1x16x16xf32>
    %52 = math.exp %51 : vector<1x16x16xf32>
    %cst_19 = arith.constant dense<0.000000e+00> : vector<1x16xf32>
    %53 = vector.multi_reduction <add>, %52, %cst_19 [2] : vector<1x16x16xf32> to vector<1x16xf32>
    %54 = vector.shape_cast %53 : vector<1x16xf32> to vector<1x16x1xf32>
    %55 = tpu.reciprocal %54 {approx = true} : vector<1x16x1xf32> -> vector<1x16x1xf32>
    %56 = vector.broadcast %55 : vector<1x16x1xf32> to vector<1x16x16xf32>
    %57 = arith.mulf %52, %56 : vector<1x16x16xf32>
    "tpu.trace_start"() <{level = 10 : i32, message = "bqk,bkd->bqd"}> : () -> ()
    %cst_20 = arith.constant dense<0.000000e+00> : vector<1x16x32xf32>
    %58 = tpu.matmul %57, %44, %cst_20 {dimension_numbers = #tpu.dot_dimension_numbers<[2], [1], [1], [2], [0, 0, 0, 1, 1, 2], [0], [0]>} : vector<1x16x16xf32>, vector<1x16x32xf32>, vector<1x16x32xf32> -> vector<1x16x32xf32>
    "tpu.trace_stop"() : () -> ()
    %59 = vector.shape_cast %58 : vector<1x16x32xf32> to vector<16x32xf32>
    %c0_21 = arith.constant 0 : index
    %c0_22 = arith.constant 0 : index
    %c0_23 = arith.constant 0 : index
    %60 = vector.load %arg5[%c0_21, %c0_22, %c0_23] : memref<4x32x128xf32, #tpu.memory_space<vmem>>, vector<1x32x128xf32>
    %61 = vector.shape_cast %60 : vector<1x32x128xf32> to vector<32x128xf32>
    %cst_24 = arith.constant dense<0.000000e+00> : vector<16x128xf32>
    %62 = tpu.matmul %59, %61, %cst_24 {dimension_numbers = #tpu.dot_dimension_numbers<[1], [0], [0], [1], [0, 0, 1, 1], [], []>} : vector<16x32xf32>, vector<32x128xf32>, vector<16x128xf32> -> vector<16x128xf32>
    %63 = arith.addf %39, %62 : vector<16x128xf32>
    %64 = vector.extract_strided_slice %32 {offsets = [0, 0, 32], sizes = [1, 16, 32], strides = [1, 1, 1]} : vector<1x16x384xf32> to vector<1x16x32xf32>
    %cst_25 = arith.constant 0.0883883461 : f32
    %65 = vector.broadcast %cst_25 : f32 to vector<1x16x32xf32>
    %66 = arith.mulf %64, %65 : vector<1x16x32xf32>
    %67 = vector.extract_strided_slice %32 {offsets = [0, 0, 160], sizes = [1, 16, 32], strides = [1, 1, 1]} : vector<1x16x384xf32> to vector<1x16x32xf32>
    %68 = vector.extract_strided_slice %32 {offsets = [0, 0, 288], sizes = [1, 16, 32], strides = [1, 1, 1]} : vector<1x16x384xf32> to vector<1x16x32xf32>
    "tpu.trace_start"() <{level = 10 : i32, message = "bqd,bkd->bqk"}> : () -> ()
    %cst_26 = arith.constant dense<0.000000e+00> : vector<1x16x16xf32>
    %69 = tpu.matmul %66, %67, %cst_26 {dimension_numbers = #tpu.dot_dimension_numbers<[2], [2], [1], [1], [0, 0, 0, 1, 1, 1], [0], [0]>} : vector<1x16x32xf32>, vector<1x16x32xf32>, vector<1x16x16xf32> -> vector<1x16x16xf32>
    "tpu.trace_stop"() : () -> ()
    %70 = vector.shape_cast %38 : vector<16x16xf32> to vector<1x16x16xf32>
    %71 = arith.addf %69, %70 : vector<1x16x16xf32>
    %cst_27 = arith.constant dense<0xFF800000> : vector<1x16xf32>
    %72 = vector.multi_reduction <maximumf>, %71, %cst_27 [2] : vector<1x16x16xf32> to vector<1x16xf32>
    %73 = vector.shape_cast %72 : vector<1x16xf32> to vector<1x16x1xf32>
    %74 = vector.broadcast %73 : vector<1x16x1xf32> to vector<1x16x16xf32>
    %75 = arith.subf %71, %74 : vector<1x16x16xf32>
    %76 = math.exp %75 : vector<1x16x16xf32>
    %cst_28 = arith.constant dense<0.000000e+00> : vector<1x16xf32>
    %77 = vector.multi_reduction <add>, %76, %cst_28 [2] : vector<1x16x16xf32> to vector<1x16xf32>
    %78 = vector.shape_cast %77 : vector<1x16xf32> to vector<1x16x1xf32>
    %79 = tpu.reciprocal %78 {approx = true} : vector<1x16x1xf32> -> vector<1x16x1xf32>
    %80 = vector.broadcast %79 : vector<1x16x1xf32> to vector<1x16x16xf32>
    %81 = arith.mulf %76, %80 : vector<1x16x16xf32>
    "tpu.trace_start"() <{level = 10 : i32, message = "bqk,bkd->bqd"}> : () -> ()
    %cst_29 = arith.constant dense<0.000000e+00> : vector<1x16x32xf32>
    %82 = tpu.matmul %81, %68, %cst_29 {dimension_numbers = #tpu.dot_dimension_numbers<[2], [1], [1], [2], [0, 0, 0, 1, 1, 2], [0], [0]>} : vector<1x16x16xf32>, vector<1x16x32xf32>, vector<1x16x32xf32> -> vector<1x16x32xf32>
    "tpu.trace_stop"() : () -> ()
    %83 = vector.shape_cast %82 : vector<1x16x32xf32> to vector<16x32xf32>
    %c1 = arith.constant 1 : index
    %c0_30 = arith.constant 0 : index
    %c0_31 = arith.constant 0 : index
    %84 = vector.load %arg5[%c1, %c0_30, %c0_31] : memref<4x32x128xf32, #tpu.memory_space<vmem>>, vector<1x32x128xf32>
    %85 = vector.shape_cast %84 : vector<1x32x128xf32> to vector<32x128xf32>
    %cst_32 = arith.constant dense<0.000000e+00> : vector<16x128xf32>
    %86 = tpu.matmul %83, %85, %cst_32 {dimension_numbers = #tpu.dot_dimension_numbers<[1], [0], [0], [1], [0, 0, 1, 1], [], []>} : vector<16x32xf32>, vector<32x128xf32>, vector<16x128xf32> -> vector<16x128xf32>
    %87 = arith.addf %63, %86 : vector<16x128xf32>
    %88 = vector.extract_strided_slice %32 {offsets = [0, 0, 64], sizes = [1, 16, 32], strides = [1, 1, 1]} : vector<1x16x384xf32> to vector<1x16x32xf32>
    %cst_33 = arith.constant 0.0883883461 : f32
    %89 = vector.broadcast %cst_33 : f32 to vector<1x16x32xf32>
    %90 = arith.mulf %88, %89 : vector<1x16x32xf32>
    %91 = vector.extract_strided_slice %32 {offsets = [0, 0, 192], sizes = [1, 16, 32], strides = [1, 1, 1]} : vector<1x16x384xf32> to vector<1x16x32xf32>
    %92 = vector.extract_strided_slice %32 {offsets = [0, 0, 320], sizes = [1, 16, 32], strides = [1, 1, 1]} : vector<1x16x384xf32> to vector<1x16x32xf32>
    "tpu.trace_start"() <{level = 10 : i32, message = "bqd,bkd->bqk"}> : () -> ()
    %cst_34 = arith.constant dense<0.000000e+00> : vector<1x16x16xf32>
    %93 = tpu.matmul %90, %91, %cst_34 {dimension_numbers = #tpu.dot_dimension_numbers<[2], [2], [1], [1], [0, 0, 0, 1, 1, 1], [0], [0]>} : vector<1x16x32xf32>, vector<1x16x32xf32>, vector<1x16x16xf32> -> vector<1x16x16xf32>
    "tpu.trace_stop"() : () -> ()
    %94 = vector.shape_cast %38 : vector<16x16xf32> to vector<1x16x16xf32>
    %95 = arith.addf %93, %94 : vector<1x16x16xf32>
    %cst_35 = arith.constant dense<0xFF800000> : vector<1x16xf32>
    %96 = vector.multi_reduction <maximumf>, %95, %cst_35 [2] : vector<1x16x16xf32> to vector<1x16xf32>
    %97 = vector.shape_cast %96 : vector<1x16xf32> to vector<1x16x1xf32>
    %98 = vector.broadcast %97 : vector<1x16x1xf32> to vector<1x16x16xf32>
    %99 = arith.subf %95, %98 : vector<1x16x16xf32>
    %100 = math.exp %99 : vector<1x16x16xf32>
    %cst_36 = arith.constant dense<0.000000e+00> : vector<1x16xf32>
    %101 = vector.multi_reduction <add>, %100, %cst_36 [2] : vector<1x16x16xf32> to vector<1x16xf32>
    %102 = vector.shape_cast %101 : vector<1x16xf32> to vector<1x16x1xf32>
    %103 = tpu.reciprocal %102 {approx = true} : vector<1x16x1xf32> -> vector<1x16x1xf32>
    %104 = vector.broadcast %103 : vector<1x16x1xf32> to vector<1x16x16xf32>
    %105 = arith.mulf %100, %104 : vector<1x16x16xf32>
    "tpu.trace_start"() <{level = 10 : i32, message = "bqk,bkd->bqd"}> : () -> ()
    %cst_37 = arith.constant dense<0.000000e+00> : vector<1x16x32xf32>
    %106 = tpu.matmul %105, %92, %cst_37 {dimension_numbers = #tpu.dot_dimension_numbers<[2], [1], [1], [2], [0, 0, 0, 1, 1, 2], [0], [0]>} : vector<1x16x16xf32>, vector<1x16x32xf32>, vector<1x16x32xf32> -> vector<1x16x32xf32>
    "tpu.trace_stop"() : () -> ()
    %107 = vector.shape_cast %106 : vector<1x16x32xf32> to vector<16x32xf32>
    %c2 = arith.constant 2 : index
    %c0_38 = arith.constant 0 : index
    %c0_39 = arith.constant 0 : index
    %108 = vector.load %arg5[%c2, %c0_38, %c0_39] : memref<4x32x128xf32, #tpu.memory_space<vmem>>, vector<1x32x128xf32>
    %109 = vector.shape_cast %108 : vector<1x32x128xf32> to vector<32x128xf32>
    %cst_40 = arith.constant dense<0.000000e+00> : vector<16x128xf32>
    %110 = tpu.matmul %107, %109, %cst_40 {dimension_numbers = #tpu.dot_dimension_numbers<[1], [0], [0], [1], [0, 0, 1, 1], [], []>} : vector<16x32xf32>, vector<32x128xf32>, vector<16x128xf32> -> vector<16x128xf32>
    %111 = arith.addf %87, %110 : vector<16x128xf32>
    %112 = vector.extract_strided_slice %32 {offsets = [0, 0, 96], sizes = [1, 16, 32], strides = [1, 1, 1]} : vector<1x16x384xf32> to vector<1x16x32xf32>
    %cst_41 = arith.constant 0.0883883461 : f32
    %113 = vector.broadcast %cst_41 : f32 to vector<1x16x32xf32>
    %114 = arith.mulf %112, %113 : vector<1x16x32xf32>
    %115 = vector.extract_strided_slice %32 {offsets = [0, 0, 224], sizes = [1, 16, 32], strides = [1, 1, 1]} : vector<1x16x384xf32> to vector<1x16x32xf32>
    %116 = vector.extract_strided_slice %32 {offsets = [0, 0, 352], sizes = [1, 16, 32], strides = [1, 1, 1]} : vector<1x16x384xf32> to vector<1x16x32xf32>
    "tpu.trace_start"() <{level = 10 : i32, message = "bqd,bkd->bqk"}> : () -> ()
    %cst_42 = arith.constant dense<0.000000e+00> : vector<1x16x16xf32>
    %117 = tpu.matmul %114, %115, %cst_42 {dimension_numbers = #tpu.dot_dimension_numbers<[2], [2], [1], [1], [0, 0, 0, 1, 1, 1], [0], [0]>} : vector<1x16x32xf32>, vector<1x16x32xf32>, vector<1x16x16xf32> -> vector<1x16x16xf32>
    "tpu.trace_stop"() : () -> ()
    %118 = vector.shape_cast %38 : vector<16x16xf32> to vector<1x16x16xf32>
    %119 = arith.addf %117, %118 : vector<1x16x16xf32>
    %cst_43 = arith.constant dense<0xFF800000> : vector<1x16xf32>
    %120 = vector.multi_reduction <maximumf>, %119, %cst_43 [2] : vector<1x16x16xf32> to vector<1x16xf32>
    %121 = vector.shape_cast %120 : vector<1x16xf32> to vector<1x16x1xf32>
    %122 = vector.broadcast %121 : vector<1x16x1xf32> to vector<1x16x16xf32>
    %123 = arith.subf %119, %122 : vector<1x16x16xf32>
    %124 = math.exp %123 : vector<1x16x16xf32>
    %cst_44 = arith.constant dense<0.000000e+00> : vector<1x16xf32>
    %125 = vector.multi_reduction <add>, %124, %cst_44 [2] : vector<1x16x16xf32> to vector<1x16xf32>
    %126 = vector.shape_cast %125 : vector<1x16xf32> to vector<1x16x1xf32>
    %127 = tpu.reciprocal %126 {approx = true} : vector<1x16x1xf32> -> vector<1x16x1xf32>
    %128 = vector.broadcast %127 : vector<1x16x1xf32> to vector<1x16x16xf32>
    %129 = arith.mulf %124, %128 : vector<1x16x16xf32>
    "tpu.trace_start"() <{level = 10 : i32, message = "bqk,bkd->bqd"}> : () -> ()
    %cst_45 = arith.constant dense<0.000000e+00> : vector<1x16x32xf32>
    %130 = tpu.matmul %129, %116, %cst_45 {dimension_numbers = #tpu.dot_dimension_numbers<[2], [1], [1], [2], [0, 0, 0, 1, 1, 2], [0], [0]>} : vector<1x16x16xf32>, vector<1x16x32xf32>, vector<1x16x32xf32> -> vector<1x16x32xf32>
    "tpu.trace_stop"() : () -> ()
    %131 = vector.shape_cast %130 : vector<1x16x32xf32> to vector<16x32xf32>
    %c3 = arith.constant 3 : index
    %c0_46 = arith.constant 0 : index
    %c0_47 = arith.constant 0 : index
    %132 = vector.load %arg5[%c3, %c0_46, %c0_47] : memref<4x32x128xf32, #tpu.memory_space<vmem>>, vector<1x32x128xf32>
    %133 = vector.shape_cast %132 : vector<1x32x128xf32> to vector<32x128xf32>
    %cst_48 = arith.constant dense<0.000000e+00> : vector<16x128xf32>
    %134 = tpu.matmul %131, %133, %cst_48 {dimension_numbers = #tpu.dot_dimension_numbers<[1], [0], [0], [1], [0, 0, 1, 1], [], []>} : vector<16x32xf32>, vector<32x128xf32>, vector<16x128xf32> -> vector<16x128xf32>
    %135 = arith.addf %111, %134 : vector<16x128xf32>
    %c0_49 = arith.constant 0 : index
    %c0_50 = arith.constant 0 : index
    %136 = vector.load %arg6[%c0_49, %c0_50] : memref<1x128xf32, #tpu.memory_space<vmem>>, vector<1x128xf32>
    %137 = vector.shape_cast %136 : vector<1x128xf32> to vector<128xf32>
    %138 = vector.shape_cast %137 : vector<128xf32> to vector<1x128xf32>
    %139 = vector.broadcast %138 : vector<1x128xf32> to vector<16x128xf32>
    %140 = arith.addf %135, %139 : vector<16x128xf32>
    %141 = arith.addf %1, %140 : vector<16x128xf32>
    %c0_51 = arith.constant 0 : index
    %c0_52 = arith.constant 0 : index
    %142 = vector.load %arg7[%c0_51, %c0_52] : memref<1x128xf32, #tpu.memory_space<vmem>>, vector<1x128xf32>
    %143 = vector.shape_cast %142 : vector<1x128xf32> to vector<128xf32>
    %c0_53 = arith.constant 0 : index
    %c0_54 = arith.constant 0 : index
    %144 = vector.load %arg8[%c0_53, %c0_54] : memref<1x128xf32, #tpu.memory_space<vmem>>, vector<1x128xf32>
    %145 = vector.shape_cast %144 : vector<1x128xf32> to vector<128xf32>
    %cst_55 = arith.constant dense<0.000000e+00> : vector<16xf32>
    %146 = vector.multi_reduction <add>, %141, %cst_55 [1] : vector<16x128xf32> to vector<16xf32>
    %147 = vector.shape_cast %146 : vector<16xf32> to vector<16x1xf32>
    %cst_56 = arith.constant 1.280000e+02 : f32
    %148 = vector.broadcast %cst_56 : f32 to vector<16x1xf32>
    %149 = arith.divf %147, %148 : vector<16x1xf32>
    %150 = vector.broadcast %149 : vector<16x1xf32> to vector<16x128xf32>
    %151 = arith.subf %141, %150 : vector<16x128xf32>
    %152 = arith.mulf %151, %151 : vector<16x128xf32>
    %cst_57 = arith.constant dense<0.000000e+00> : vector<16xf32>
    %153 = vector.multi_reduction <add>, %152, %cst_57 [1] : vector<16x128xf32> to vector<16xf32>
    %154 = vector.shape_cast %153 : vector<16xf32> to vector<16x1xf32>
    %cst_58 = arith.constant 1.280000e+02 : f32
    %155 = vector.broadcast %cst_58 : f32 to vector<16x1xf32>
    %156 = arith.divf %154, %155 : vector<16x1xf32>
    %157 = vector.broadcast %149 : vector<16x1xf32> to vector<16x128xf32>
    %158 = arith.subf %141, %157 : vector<16x128xf32>
    %cst_59 = arith.constant 9.99999974E-6 : f32
    %159 = vector.broadcast %cst_59 : f32 to vector<16x1xf32>
    %160 = arith.addf %156, %159 : vector<16x1xf32>
    %161 = math.rsqrt %160 : vector<16x1xf32>
    %162 = vector.broadcast %161 : vector<16x1xf32> to vector<16x128xf32>
    %163 = arith.mulf %158, %162 : vector<16x128xf32>
    %164 = vector.shape_cast %143 : vector<128xf32> to vector<1x128xf32>
    %165 = vector.broadcast %164 : vector<1x128xf32> to vector<16x128xf32>
    %166 = arith.mulf %163, %165 : vector<16x128xf32>
    %167 = vector.shape_cast %145 : vector<128xf32> to vector<1x128xf32>
    %168 = vector.broadcast %167 : vector<1x128xf32> to vector<16x128xf32>
    %169 = arith.addf %166, %168 : vector<16x128xf32>
    %c0_60 = arith.constant 0 : index
    %c0_61 = arith.constant 0 : index
    %170 = vector.load %arg9[%c0_60, %c0_61] : memref<128x512xf32, #tpu.memory_space<vmem>>, vector<128x512xf32>
    %cst_62 = arith.constant dense<0.000000e+00> : vector<16x512xf32>
    %171 = tpu.matmul %169, %170, %cst_62 {dimension_numbers = #tpu.dot_dimension_numbers<[1], [0], [0], [1], [0, 0, 1, 1], [], []>} : vector<16x128xf32>, vector<128x512xf32>, vector<16x512xf32> -> vector<16x512xf32>
    %c0_63 = arith.constant 0 : index
    %c0_64 = arith.constant 0 : index
    %172 = vector.load %arg10[%c0_63, %c0_64] : memref<1x512xf32, #tpu.memory_space<vmem>>, vector<1x512xf32>
    %173 = vector.shape_cast %172 : vector<1x512xf32> to vector<512xf32>
    %174 = vector.shape_cast %173 : vector<512xf32> to vector<1x512xf32>
    %175 = vector.broadcast %174 : vector<1x512xf32> to vector<16x512xf32>
    %176 = arith.addf %171, %175 : vector<16x512xf32>
    %cst_65 = arith.constant 0.000000e+00 : f32
    %177 = vector.broadcast %cst_65 : f32 to vector<16x512xf32>
    %178 = arith.maximumf %176, %177 : vector<16x512xf32>
    %c0_66 = arith.constant 0 : index
    %c0_67 = arith.constant 0 : index
    %179 = vector.load %arg11[%c0_66, %c0_67] : memref<512x128xf32, #tpu.memory_space<vmem>>, vector<512x128xf32>
    %cst_68 = arith.constant dense<0.000000e+00> : vector<16x128xf32>
    %180 = tpu.matmul %178, %179, %cst_68 {dimension_numbers = #tpu.dot_dimension_numbers<[1], [0], [0], [1], [0, 0, 1, 1], [], []>} : vector<16x512xf32>, vector<512x128xf32>, vector<16x128xf32> -> vector<16x128xf32>
    %c0_69 = arith.constant 0 : index
    %c0_70 = arith.constant 0 : index
    %181 = vector.load %arg12[%c0_69, %c0_70] : memref<1x128xf32, #tpu.memory_space<vmem>>, vector<1x128xf32>
    %182 = vector.shape_cast %181 : vector<1x128xf32> to vector<128xf32>
    %183 = vector.shape_cast %182 : vector<128xf32> to vector<1x128xf32>
    %184 = vector.broadcast %183 : vector<1x128xf32> to vector<16x128xf32>
    %185 = arith.addf %180, %184 : vector<16x128xf32>
    %186 = arith.addf %141, %185 : vector<16x128xf32>
    %187 = vector.shape_cast %186 : vector<16x128xf32> to vector<1x16x128xf32>
    %c0_71 = arith.constant 0 : index
    %c0_72 = arith.constant 0 : index
    %c0_73 = arith.constant 0 : index
    %188 = vector.load %arg13[%c0_71, %c0_72, %c0_73] : memref<1x16x128xf32, #tpu.memory_space<vmem>>, vector<1x16x128xf32>
    tpu.vector_store %arg13[%c0_71, %c0_72, %c0_73], %187 {strides = array<i32>} : memref<1x16x128xf32, #tpu.memory_space<vmem>>, vector<1x16x128xf32>,
    return
  }
  func.func @transform_0(%arg0: i32) -> (i32, i32, i32) {
    %c0_i32 = arith.constant 0 : i32
    %c0_i32_0 = arith.constant 0 : i32
    %c0_i32_1 = arith.constant 0 : i32
    return %arg0, %c0_i32, %c0_i32_0 : i32, i32, i32
  }
  func.func @transform_1(%arg0: i32) -> (i32, i32) {
    %c0_i32 = arith.constant 0 : i32
    %c0_i32_0 = arith.constant 0 : i32
    %c0_i32_1 = arith.constant 0 : i32
    return %c0_i32, %c0_i32_0 : i32, i32
  }
  func.func @transform_2(%arg0: i32) -> (i32, i32) {
    %c0_i32 = arith.constant 0 : i32
    %c0_i32_0 = arith.constant 0 : i32
    %c0_i32_1 = arith.constant 0 : i32
    return %c0_i32, %c0_i32_0 : i32, i32
  }
  func.func @transform_3(%arg0: i32) -> (i32, i32) {
    %c0_i32 = arith.constant 0 : i32
    %c0_i32_0 = arith.constant 0 : i32
    %c0_i32_1 = arith.constant 0 : i32
    return %c0_i32, %c0_i32_0 : i32, i32
  }
  func.func @transform_4(%arg0: i32) -> (i32, i32, i32) {
    %c0_i32 = arith.constant 0 : i32
    %c0_i32_0 = arith.constant 0 : i32
    %c0_i32_1 = arith.constant 0 : i32
    %c0_i32_2 = arith.constant 0 : i32
    return %c0_i32, %c0_i32_0, %c0_i32_1 : i32, i32, i32
  }
  func.func @transform_5(%arg0: i32) -> (i32, i32) {
    %c0_i32 = arith.constant 0 : i32
    %c0_i32_0 = arith.constant 0 : i32
    %c0_i32_1 = arith.constant 0 : i32
    return %c0_i32, %c0_i32_0 : i32, i32
  }
  func.func @transform_6(%arg0: i32) -> (i32, i32) {
    %c0_i32 = arith.constant 0 : i32
    %c0_i32_0 = arith.constant 0 : i32
    %c0_i32_1 = arith.constant 0 : i32
    return %c0_i32, %c0_i32_0 : i32, i32
  }
  func.func @transform_7(%arg0: i32) -> (i32, i32) {
    %c0_i32 = arith.constant 0 : i32
    %c0_i32_0 = arith.constant 0 : i32
    %c0_i32_1 = arith.constant 0 : i32
    return %c0_i32, %c0_i32_0 : i32, i32
  }
  func.func @transform_8(%arg0: i32) -> (i32, i32) {
    %c0_i32 = arith.constant 0 : i32
    %c0_i32_0 = arith.constant 0 : i32
    %c0_i32_1 = arith.constant 0 : i32
    return %c0_i32, %c0_i32_0 : i32, i32
  }
  func.func @transform_9(%arg0: i32) -> (i32, i32) {
    %c0_i32 = arith.constant 0 : i32
    %c0_i32_0 = arith.constant 0 : i32
    %c0_i32_1 = arith.constant 0 : i32
    return %c0_i32, %c0_i32_0 : i32, i32
  }
  func.func @transform_10(%arg0: i32) -> (i32, i32) {
    %c0_i32 = arith.constant 0 : i32
    %c0_i32_0 = arith.constant 0 : i32
    %c0_i32_1 = arith.constant 0 : i32
    return %c0_i32, %c0_i32_0 : i32, i32
  }
  func.func @transform_11(%arg0: i32) -> (i32, i32) {
    %c0_i32 = arith.constant 0 : i32
    %c0_i32_0 = arith.constant 0 : i32
    %c0_i32_1 = arith.constant 0 : i32
    return %c0_i32, %c0_i32_0 : i32, i32
  }
  func.func @transform_12(%arg0: i32) -> (i32, i32, i32) {
    %c0_i32 = arith.constant 0 : i32
    %c0_i32_0 = arith.constant 0 : i32
    %c0_i32_1 = arith.constant 0 : i32
    return %arg0, %c0_i32, %c0_i32_0 : i32, i32, i32
  }
}

</mosaic_0001>

<bundles_post_ra>
// kernel: tpu_custom_call.1
= control target key start
LH: loop header
LB: loop body
LE: loop exit
PB: predicated region body
PF: predicated region fallthrough
CT: control target
= control target key end

     0   :  { %s2785_s0 = inlined_call_operand.hbm [shape: f32[2,16,128], index: 0, kind: input, shape index: {}]   ;;  %s2786_s1 = inlined_call_operand.hbm [shape: f32[1,128], index: 1, kind: input, shape index: {}]   ;;  %s2787_s2 = inlined_call_operand.vmem [shape: f32[1,128], index: 2, kind: input, shape index: {}]   ;;  %s2788_s3 = inlined_call_operand.hbm [shape: f32[128,384], index: 3, kind: input, shape index: {}]   ;;  %s2789_s4 = inlined_call_operand.hbm [shape: f32[4,32,128], index: 4, kind: input, shape index: {}]   ;;  %s2790_s5 = inlined_call_operand.vmem [shape: f32[1,128], index: 5, kind: input, shape index: {}]   ;;  %s2791_s6 = inlined_call_operand.vmem [shape: f32[1,128], index: 6, kind: input, shape index: {}]   ;;  %s2792_s7 = inlined_call_operand.hbm [shape: f32[1,128], index: 7, kind: input, shape index: {}]   ;;  %s2793_s8 = inlined_call_operand.hbm [shape: f32[128,512], index: 8, kind: input, shape index: {}]   ;;  %s2794_s9 = inlined_call_operand.vmem [shape: f32[1,512], index: 9, kind: input, shape index: {}]   ;;  %s2795_s10 = inlined_call_operand.hbm [shape: f32[512,128], index: 10, kind: input, shape index: {}]   ;;  %s2796_s11 = inlined_call_operand.vmem [shape: f32[1,128], index: 11, kind: input, shape index: {}]   ;;  %s2797_s12 = inlined_call_operand.hbm [shape: f32[2,16,128], index: 12, kind: output, shape index: {}]  }
   0x1   :  { %2801 = sst [smem:[#allocation20_spill]] %s2786_s1 }
   0x2   :  { %2802 = sst [smem:[#allocation21_spill]] %s2788_s3 }
   0x3   :  { %2803 = sst [smem:[#allocation22_spill]] %s2789_s4 }
   0x4   :  { %2804 = sst [smem:[#allocation23_spill]] %s2792_s7 }
   0x5   :  { %2805 = sst [smem:[#allocation24_spill]] %s2793_s8 }
   0x6   :  { %2806 = sst [smem:[#allocation25_spill]] %s2795_s10 }
   0x7   :  { %2807 = sst [smem:[#allocation26_spill]] %s2797_s12 }
   0x8   :  { %17 = vsyncpa [#allocation3], 0 }
   0x9   :  { %19 = vsyncpa [#allocation3 + $0x1], 0 }
   0xa   :  { %20 = vsyncpa [#allocation6], 0 }
   0xb   :  { %21 = vsyncpa [#allocation9], 0 }
   0xc   :  { %22 = vsyncpa [#allocation12], 0 }
   0xd   :  { %23 = vsyncpa [#allocation4], 0 }
   0xe   :  { %25 = vsyncpa [#allocation4 + $0x1], 0  ;;  %s2398_s21 = smov 0   ;;  %s2400_s22 = smov 0  }
   0xf   :  { %s2402_s23 = smov 0   ;;  %s2404_s24 = smov 0  }
  0x10 LB: > { %s2808_s1 = sld [smem:[#allocation20_spill]]  ;;  %s2422_s28 = sadd.s32 4294967295, %s2312_s24   ;;  %s2312_s24 = sphi %s2404_s24, %s2828_s24   ;;  %s2308_s23 = sphi %s2402_s23, %s2827_s23   ;;  %s2304_s22 = sphi %s2400_s22, %s2826_s22   ;;  %s2300_s21 = sphi %s2398_s21, %s2825_s21  }
  0x11   : > { %p1780_p0 = scmp.ge.s32.totalorder %s2312_s24, 1  ;;  %p52_p1 = scmp.eq.s32.totalorder %s2422_s28, 0 }
  0x12   : > { %p319_p2 = scmp.lt.s32.totalorder %s2312_s24, 3  ;;  %s2314_s30 = smov [#allocation5]  }
  0x13   : > { %s333_s13 = sshll.u32 %s2314_s30, 4  ;;  %s2810_s4 = sld [smem:[#allocation22_spill]]  ;;  %s334_s13 = int_to_ptr.vmem [resolvable:$true] %s333_s13 }
  0x14   : > { %p2427_p3 = pnand %p1780_p0, %p319_p2  ;;  %s2315_s18 = smov [#allocation8]  }
  0x15   : > { %s361_s19 = sshll.u32 %s2315_s18, 4  ;;  %s2799_s20 = smov 128   ;;  %s362_s19 = int_to_ptr.vmem [resolvable:$true] %s361_s19 }
  0x16   : > { %s331_s27 = sshll.u32 %s2808_s1, 4  ;;  %p1869_p5 = pneg %p2427_p3  ;;  %s332_s27 = int_to_ptr.hbm [resolvable:$true] %s331_s27 }
  0x17   : > { %s2800_s25 = smov 8   ;;  %s2812_s8 = sld [smem:[#allocation24_spill]] }
  0x18   : > { %p2439_p6 = pnand %p1869_p5, %p52_p1  ;;  %s2318_s15 = smov [#allocation11]  }
  0x19   : > { %s359_s16 = sshll.u32 %s2810_s4, 4  ;;  %s393_s1 = sshll.u32 %s2318_s15, 4  ;;  %s360_s16 = int_to_ptr.hbm [resolvable:$true] %s359_s16  ;;  %s394_s1 = int_to_ptr.vmem [resolvable:$true] %s393_s1 }
  0x1a   : > { %1872 = dma.hbm_to_vmem [thread:$0]  (!%p2439_p6), %s332_s27, 16, %s334_s13, [#allocation6]  }
  0x1b   : > { %1878 = dma.hbm_to_vmem [thread:$0]  (!%p2439_p6), %s360_s16, 2048, %s362_s19, [#allocation9], %s2799_s20, %s2799_s20, %s2800_s25  }
  0x1c   : > { %s2813_s3 = sld [smem:[#allocation21_spill]]  ;;  %s2319_s13 = smov 512  }
  0x1d   : > { %s391_s14 = sshll.u32 %s2812_s8, 4  ;;  %s2320_s12 = smov 32   ;;  %s392_s14 = int_to_ptr.hbm [resolvable:$true] %s391_s14 }
  0x1e   : > { %1884 = dma.hbm_to_vmem [thread:$0]  (!%p2439_p6), %s392_s14, 8192, %s394_s1, [#allocation12], %s2319_s13, %s2319_s13, %s2320_s12  }
  0x1f   : > { %s2321_s16 = smov [#allocation7]   ;;  %s2322_s26 = smov 384  }
  0x20   : > { %s347_s19 = sshll.u32 %s2321_s16, 4  ;;  %s2323_s30 = smov 24   ;;  %s348_s19 = int_to_ptr.vmem [resolvable:$true] %s347_s19 }
  0x21   : > { %s2814_s7 = sld [smem:[#allocation23_spill]]  ;;  %s2324_s1 = smov [#allocation10]  }
  0x22   : > { %s345_s27 = sshll.u32 %s2813_s3, 4  ;;  %s382_s12 = sshll.u32 %s2324_s1, 4  ;;  %s346_s27 = int_to_ptr.hbm [resolvable:$true] %s345_s27  ;;  %s383_s12 = int_to_ptr.vmem [resolvable:$true] %s382_s12 }
  0x23   : > { %1875 = dma.hbm_to_vmem [thread:$0]  (!%p2439_p6), %s346_s27, 6144, %s348_s19, [#allocation6], %s2322_s26, %s2322_s26, %s2323_s30  }
  0x24   : > { %s2815_s10 = sld [smem:[#allocation25_spill]]  ;;  %s2325_s27 = smov [#allocation13]  }
  0x25   : > { %s410_s19 = sshll.u32 %s2325_s27, 4  ;;  %s1779_s26 = sadd.s32 4294967294, %s2312_s24   ;;  %s411_s19 = int_to_ptr.vmem [resolvable:$true] %s410_s19 }
  0x26   : > { %s2475_s30 = sadd.s32 1, %s2312_s24   ;;  %s38_s4 = sadd.s32 1, %s2308_s23 }
  0x27   : > { %s380_s18 = sshll.u32 %s2814_s7, 4  ;;  %s35_s15 = ssub.s32 %s2312_s24, %s2475_s30  ;;  %s381_s18 = int_to_ptr.hbm [resolvable:$true] %s380_s18 }
  0x28   : > { %1881 = dma.hbm_to_vmem [thread:$0]  (!%p2439_p6), %s381_s18, 16, %s383_s12, [#allocation9]  }
  0x29   : > { %p36_p7 = scmp.eq.s32.totalorder %s35_s15, 0  ;;  %p45_p8 = scmp.ne.s32.totalorder %s2308_s23, %s2304_s22 }
  0x2a   : > { %s408_s16 = sshll.u32 %s2815_s10, 4  ;;  %p46_p9 = scmp.eq.s32.totalorder %s2312_s24, 0  ;;  %s409_s16 = int_to_ptr.hbm [resolvable:$true] %s408_s16 }
  0x2b   : > { %1887 = dma.hbm_to_vmem [thread:$0]  (!%p2439_p6), %s409_s16, 8192, %s411_s19, [#allocation12], %s2799_s20, %s2799_s20, %s2800_s25  }
  0x2c   : > { %p51_p10 = scmp.ne.s32.totalorder %s2304_s22, %s2300_s21  ;;  %p2488_p11 = por %p46_p9, %p45_p8 }
  0x2d   : > { %s2486_s18 = scalar_select %p36_p7, %s2308_s23, %s38_s4  }
  0x2e   : > { %p2494_p12 = por %p52_p1, %p51_p10  ;;  %p306_p13 = scmp.eq.s32.totalorder %s2422_s28, 1 }
  0x2f   : > { %p312_p0 = scmp.eq.s32.totalorder %s1779_s26, 1  ;;  %p1902_p2 = scmp.lt.s32.totalorder %s2312_s24, 2 }
  0x30   : > { %s427_s12 = sand.u32 1, %s2308_s23   ;;  %p2501_p5 = por %p306_p13, %p45_p8 }
  0x31   : > { %p2505_p6 = por %p312_p0, %p51_p10  ;;  %s1788_s16 = sshll.u32 %s427_s12, 4 }
  0x32   : > { %s1837_s27 = sshll.u32 %s2312_s24, 4  ;;  %s431_s20 = scalar_lea.vmem [#allocation2], %s1788_s16 }
  0x33   : > { %s436_s4 = scalar_lea.hbm %s2785_s0, %s1837_s27  ;;  %s439_s25 = sshll.u32 %s431_s20, 4  ;;  %s440_s25 = int_to_ptr.vmem [resolvable:$true] %s439_s25 }
  0x34   : > { %s437_s3 = sshll.u32 %s436_s4, 4  ;;  %p2515_p7 = pnand %p1902_p2, %p2488_p11  ;;  %s438_s3 = int_to_ptr.hbm [resolvable:$true] %s437_s3 }
  0x35   : > { %s428_s7 = scalar_lea.sflag [#allocation3], %s427_s12  ;;  %s2204_s8 = sshra.s32 %s438_s3, 4  ;;  %s2205_s8 = int_to_ptr.hbm [resolvable:$true] %s2204_s8 }
  0x36   : > { %s2206_s10 = scalar_lea.hbm %s2205_s8, 16  ;;  %p2208_p9 = pneg %p2515_p7 }
  0x37   : > { %p2207_p8 = scmp.ne.s32.totalorder %s2205_s8, %s2206_s10  ;;  %s2211_s27 = scalar_lea.hbm %s2785_s0, 32 }
  0x38   : > { %p2212_p11 = scmp.lt.s32.totalorder %s2205_s8, %s2785_s0  ;;  %p2213_p0 = scmp.lt.s32.totalorder %s2211_s27, %s2206_s10 }
  0x39   : > { %p2209_p10 = pnand %p2208_p9, %p2207_p8 }
  0x3a   : > { %p2214_p2 = por %p2213_p0, %p2212_p11 }
  0x3b   : > { %p2210_p13 = pneg %p2209_p10 }
  0x3d   : > { %p2215_p4 = pnand %p2214_p2, %p2210_p13 }
  0x3f   : > { %2218 = shalt.err (!%p2215_p4)
}
  0x40   : > { %s2821_s12 = smov 8   ;;  %s2822_s15 = smov 128  }
  0x41   : > { %1891 = dma.hbm_to_vmem [thread:$0]  (!%p2515_p7), %s438_s3, 256, %s440_s25, %s428_s7, %s2822_s15, %s2822_s15, %s2821_s12  }
  0x42   : > { %451 = sbr.rel (%p2427_p3) target bundleno = 2248 (0x8c8), region = 68  ;;  %s2535_s4 = sand.u32 (!%p2427_p3), 1, %s2304_s22  }
  0x43   : > { %s1792_s8 = sshll.u32 (!%p2427_p3), %s2535_s4, 4  ;;  %s454_s10 = scalar_lea.sflag (!%p2427_p3), [#allocation3], %s2535_s4 }
  0x44   : > { %s457_s16 = scalar_lea.vmem (!%p2427_p3), [#allocation2], %s1792_s8 }
  0x47   : > { %2279 = dma.done.wait (%p2494_p12), %s454_s10, 256  }
  0x48   : > { %2281 = vsyncadd (%p2494_p12), %s454_s10, 4294967040 }
  0x49   : > { %2283 = dma.done.wait (%p52_p1), [#allocation6], 6160  }
  0x4a   : > { %2285 = vsyncadd (%p52_p1), [#allocation6], 4294961136 }
  0x4b   : > { %2287 = dma.done.wait (%p52_p1), [#allocation9], 2064  }
  0x4c   : > { %2289 = vsyncadd (%p52_p1), [#allocation9], 4294965232 }
  0x4d   : > { %2291 = dma.done.wait (%p52_p1), [#allocation12], 16384  }
  0x4e   : > { %2293 = vsyncadd (%p52_p1), [#allocation12], 4294950912  ;;  %v2557_v0 = vld [vmem:[%s457_s16] sm:$0xff]  ;;  %v2560_v1 = vld [vmem:[%s457_s16 + $0x8] sm:$0xff]  ;;  %v2326_v2 = vmov 128.0   ;;  %vm718_vm7 = vcmask 261120  }
  0x4f   : > { %533 = vadd.xlane.f32.xlu0 %v2557_v0  ;;  %1982 = vrcp.f32 %v2326_v2  ;;  %v635_v5 = vld [vmem:[#allocation7 + $0x168] sm:$0xff]  ;;  %v636_v6 = vld [vmem:[#allocation7 + $0x170] sm:$0xff]  ;;  %v637_v7 = vld [vmem:[#allocation7 + $0x178] sm:$0xff]  ;;  %vm754_vm9 = vcmask 130048   ;;  %s2328_s29 = smov 96   ;;  %s2329_s25 = smov 32  }
  0x50   : > { %638 = vmatpush.msra.mxu0 %v635_v5  ;;  %661 = vmatpush.msra.mxu1 %v636_v6  ;;  %v632_v8 = vld [vmem:[#allocation7 + $0x150] sm:$0xff]  ;;  %v633_v9 = vld [vmem:[#allocation7 + $0x158] sm:$0xff]  ;;  %v634_v10 = vld [vmem:[#allocation7 + $0x160] sm:$0xff]  ;;  %s2330_s1 = smov 64   ;;  %s1838_s16 = sshll.u32 %s2422_s28, 4 }
  0x51   : > { %684 = vmatpush.msra.mxu2 %v637_v7  ;;  %v629_v23 = vld [vmem:[#allocation7 + $0x138] sm:$0xff]  ;;  %v630_v24 = vld [vmem:[#allocation7 + $0x140] sm:$0xff]  ;;  %v631_v25 = vld [vmem:[#allocation7 + $0x148] sm:$0xff]  ;;  %s1634_s28 = scalar_lea.sflag [#allocation4], %s2535_s4 }
  0x52   : > { %639 = vmatpush.msra.mxu0 %v632_v8  ;;  %662 = vmatpush.msra.mxu1 %v633_v9  ;;  %v626_v26 = vld [vmem:[#allocation7 + $0x120] sm:$0xff]  ;;  %v627_v27 = vld [vmem:[#allocation7 + $0x128] sm:$0xff]  ;;  %v628_v28 = vld [vmem:[#allocation7 + $0x130] sm:$0xff] }
  0x53   : > { %685 = vmatpush.msra.mxu2 %v634_v10  ;;  %v623_v29 = vld [vmem:[#allocation7 + $0x108] sm:$0xff]  ;;  %v624_v30 = vld [vmem:[#allocation7 + $0x110] sm:$0xff]  ;;  %v625_v31 = vld [vmem:[#allocation7 + $0x118] sm:$0xff] }
  0x54   : > { %640 = vmatpush.msra.mxu0 %v629_v23  ;;  %663 = vmatpush.msra.mxu1 %v630_v24  ;;  %v620_v32 = vld [vmem:[#allocation7 + $0xf0] sm:$0xff]  ;;  %v621_v33 = vld [vmem:[#allocation7 + $0xf8] sm:$0xff]  ;;  %v622_v34 = vld [vmem:[#allocation7 + $0x100] sm:$0xff] }
  0x55   : > { %v1983_v3 = vpop.eup %1982  ;;  %686 = vmatpush.msra.mxu2 %v631_v25  ;;  %v617_v35 = vld [vmem:[#allocation7 + $0xd8] sm:$0xff]  ;;  %v618_v36 = vld [vmem:[#allocation7 + $0xe0] sm:$0xff]  ;;  %v619_v37 = vld [vmem:[#allocation7 + $0xe8] sm:$0xff] }
  0x56   : > { %v538_v4 = vmul.f32 128.0, %v1983_v3  ;;  %vm542_vm0 = vweird.f32 %v1983_v3  ;;  %641 = vmatpush.msra.mxu0 %v626_v26  ;;  %664 = vmatpush.msra.mxu1 %v627_v27  ;;  %v614_v38 = vld [vmem:[#allocation7 + $0xc0] sm:$0xff]  ;;  %v615_v39 = vld [vmem:[#allocation7 + $0xc8] sm:$0xff]  ;;  %v616_v40 = vld [vmem:[#allocation7 + $0xd0] sm:$0xff] }
  0x57   : > { %535 = vadd.xlane.f32.xlu0 %v2560_v1  ;;  %687 = vmatpush.msra.mxu2 %v628_v28  ;;  %v611_v41 = vld [vmem:[#allocation7 + $0xa8] sm:$0xff]  ;;  %v612_v42 = vld [vmem:[#allocation7 + $0xb0] sm:$0xff]  ;;  %v613_v43 = vld [vmem:[#allocation7 + $0xb8] sm:$0xff] }
  0x58   : > { %v539_v11 = vsub.f32 1.0, %v538_v4  ;;  %642 = vmatpush.msra.mxu0 %v623_v29  ;;  %665 = vmatpush.msra.mxu1 %v624_v30  ;;  %v608_v44 = vld [vmem:[#allocation7 + $0x90] sm:$0xff]  ;;  %v609_v45 = vld [vmem:[#allocation7 + $0x98] sm:$0xff]  ;;  %v610_v46 = vld [vmem:[#allocation7 + $0xa0] sm:$0xff] }
  0x59   : > { %688 = vmatpush.msra.mxu2 %v625_v31  ;;  %v605_v47 = vld [vmem:[#allocation7 + $0x78] sm:$0xff]  ;;  %v606_v48 = vld [vmem:[#allocation7 + $0x80] sm:$0xff]  ;;  %v607_v49 = vld [vmem:[#allocation7 + $0x88] sm:$0xff] }
  0x5a   : > { %v540_v12 = vmul.f32 %v1983_v3, %v539_v11  ;;  %643 = vmatpush.msra.mxu0 %v620_v32  ;;  %666 = vmatpush.msra.mxu1 %v621_v33  ;;  %v602_v50 = vld [vmem:[#allocation7 + $0x60] sm:$0xff]  ;;  %v603_v51 = vld [vmem:[#allocation7 + $0x68] sm:$0xff]  ;;  %v604_v52 = vld [vmem:[#allocation7 + $0x70] sm:$0xff] }
  0x5b   : > { %689 = vmatpush.msra.mxu2 %v622_v34  ;;  %v599_v53 = vld [vmem:[#allocation7 + $0x48] sm:$0xff]  ;;  %v600_v54 = vld [vmem:[#allocation7 + $0x50] sm:$0xff]  ;;  %v601_v55 = vld [vmem:[#allocation7 + $0x58] sm:$0xff] }
  0x5c   : > { %v541_v13 = vadd.f32 %v1983_v3, %v540_v12  ;;  %644 = vmatpush.msra.mxu0 %v617_v35  ;;  %667 = vmatpush.msra.mxu1 %v618_v36  ;;  %v596_v56 = vld [vmem:[#allocation7 + $0x30] sm:$0xff]  ;;  %v597_v57 = vld [vmem:[#allocation7 + $0x38] sm:$0xff]  ;;  %v598_v58 = vld [vmem:[#allocation7 + $0x40] sm:$0xff] }
  0x5d   : > { %690 = vmatpush.msra.mxu2 %v619_v37  ;;  %v593_v59 = vld [vmem:[#allocation7 + $0x18] sm:$0xff]  ;;  %v594_v60 = vld [vmem:[#allocation7 + $0x20] sm:$0xff]  ;;  %v595_v61 = vld [vmem:[#allocation7 + $0x28] sm:$0xff] }
  0x5e   : > { %v2563_v14 = vsel %vm542_vm0, %v1983_v3, %v541_v13  ;;  %645 = vmatpush.msra.mxu0 %v614_v38  ;;  %668 = vmatpush.msra.mxu1 %v615_v39  ;;  %v590_v62 = vld [vmem:[#allocation7] sm:$0xff]  ;;  %v591_v63 = vld [vmem:[#allocation7 + $0x8] sm:$0xff]  ;;  %v592_v2 = vld [vmem:[#allocation7 + $0x10] sm:$0xff] }
  0x5f   : > { %691 = vmatpush.msra.mxu2 %v616_v40  ;;  %v1977_v24 = vld [vmem:[%s2787_s2] ss:$0 sm:$0xff]  ;;  %v707_v40 = vlaneseq }
  0x60   : > { %646 = vmatpush.msra.mxu0 %v611_v41  ;;  %669 = vmatpush.msra.mxu1 %v612_v42 }
  0x61   : > { %692 = vmatpush.msra.mxu2 %v613_v43  ;;  %v708_v41 = vshrl.u32 %v707_v40, 7  ;;  %v711_v42 = vand.u32 127, %v707_v40  ;;  %v2327_v43 = vmov -1e+30  }
  0x62   : > { %647 = vmatpush.msra.mxu0 %v608_v44  ;;  %670 = vmatpush.msra.mxu1 %v609_v45 }
  0x63   : > { %693 = vmatpush.msra.mxu2 %v610_v46  ;;  %vm712_vm8 = vcmp.le.s32.totalorder %v711_v42, %v708_v41  ;;  %v709_v45 = vadd.s32 8, %v708_v41 }
  0x64   : > { %648 = vmatpush.msra.mxu0 %v605_v47  ;;  %671 = vmatpush.msra.mxu1 %v606_v48  ;;  %v2600_v44 = vsel %vm712_vm8, 0.0, %v2327_v43 }
  0x65   : > { %694 = vmatpush.msra.mxu2 %v607_v49  ;;  %vm713_vm10 = vcmp.le.s32.totalorder %v711_v42, %v709_v45 }
  0x66   : > { %649 = vmatpush.msra.mxu0 %v602_v50  ;;  %672 = vmatpush.msra.mxu1 %v603_v51  ;;  %v2604_v49 = vsel %vm713_vm10, 0.0, %v2327_v43 }
  0x67   : > { %695 = vmatpush.msra.mxu2 %v604_v52 }
  0x68   : > { %650 = vmatpush.msra.mxu0 %v599_v53  ;;  %673 = vmatpush.msra.mxu1 %v600_v54  ;;  %v809_v53 = vld [vmem:[#allocation8 + $0x18] sm:$0xff]  ;;  %v808_v54 = vld [vmem:[#allocation8 + $0x10] sm:$0xff] }
  0x69   : > { %696 = vmatpush.msra.mxu2 %v601_v55  ;;  %v807_v55 = vld [vmem:[#allocation8 + $0x8] sm:$0xff] }
  0x6a   : > { %651 = vmatpush.msra.mxu0 %v596_v56  ;;  %674 = vmatpush.msra.mxu1 %v597_v57  ;;  %v806_v56 = vld [vmem:[#allocation8] sm:$0xff] }
  0x6b   : > { %697 = vmatpush.msra.mxu2 %v598_v58 }
  0x6c   : > { %652 = vmatpush.msra.mxu0 %v593_v59  ;;  %675 = vmatpush.msra.mxu1 %v594_v60 }
  0x6d   : > { %698 = vmatpush.msra.mxu2 %v595_v61 }
  0x6e   : > { %653 = vmatpush.msra.mxu0 %v590_v62  ;;  %676 = vmatpush.msra.mxu1 %v591_v63 }
  0x6f   : > { %699 = vmatpush.msra.mxu2 %v592_v2 }
  0x71   : > { %960 = vmatpush.msrb.mxu2 %v809_v53 }
  0x73   : > { %961 = vmatpush.msrb.mxu2 %v808_v54 }
  0x75   : > { %962 = vmatpush.msrb.mxu2 %v807_v55 }
  0x77   : > { %963 = vmatpush.msrb.mxu2 %v806_v56 }
  0xc2   : > { %v534_v15 = vpop.xlane.xlu0 %533 }
  0xc3   : > { %v544_v16 = vmul.f32 %v2563_v14, %v534_v15 }
  0xc5   : > { %v2567_v17 = vsub.f32 %v2557_v0, %v544_v16 }
  0xc7   : > { %v548_v18 = vmul.f32 %v2567_v17, %v2567_v17 }
  0xc9   : > { %550 = vadd.xlane.f32.xlu1 %v548_v18 }
  0xca   : > { %v536_v19 = vpop.xlane.xlu0 %535 }
  0xcb   : > { %v545_v20 = vmul.f32 %v2563_v14, %v536_v19  ;;  %v1976_v19 = vld [vmem:[#allocation5] ss:$0 sm:$0xff] }
  0xcd   : > { %v2573_v21 = vsub.f32 %v2560_v1, %v545_v20 }
  0xcf   : > { %v549_v22 = vmul.f32 %v2573_v21, %v2573_v21 }
  0xd1   : > { %552 = vadd.xlane.f32.xlu1 %v549_v22 }
 0x13c   : > { %v551_v3 = vpop.xlane.xlu1 %550 }
 0x13d   : > { %v554_v4 = vmul.f32 %v551_v3, %v2563_v14 }
 0x13f   : > { %v556_v5 = vadd.f32 1e-05, %v554_v4 }
 0x141   : > { %1984 = vrsqrt.f32 %v556_v5  ;;  %vm564_vm2 = vweird.f32 %v556_v5 }
 0x144   : > { %v553_v6 = vpop.xlane.xlu1 %552 }
 0x145   : > { %v555_v7 = vmul.f32 %v553_v6, %v2563_v14 }
 0x147   : > { %v1985_v8 = vpop.eup %1984  ;;  %v557_v9 = vadd.f32 1e-05, %v555_v7 }
 0x148   : > { %v559_v10 = vmul.f32 %v1985_v8, %v556_v5  ;;  %vm565_vm1 = vweird.f32 %v1985_v8 }
 0x149   : > { %1986 = vrsqrt.f32 %v557_v9  ;;  %vm566_vm3 = vmor %vm564_vm2, %vm565_vm1  ;;  %vm574_vm5 = vweird.f32 %v557_v9 }
 0x14a   : > { %v560_v11 = vmul.f32 %v1985_v8, %v559_v10 }
 0x14c   : > { %v561_v12 = vmul.f32 0.5, %v560_v11 }
 0x14e   : > { %v562_v13 = vsub.f32 1.5, %v561_v12 }
 0x14f   : > { %v1987_v15 = vpop.eup %1986 }
 0x150   : > { %v563_v16 = vmul.f32 %v1985_v8, %v562_v13  ;;  %v569_v18 = vmul.f32 %v1987_v15, %v557_v9  ;;  %vm575_vm4 = vweird.f32 %v1987_v15 }
 0x151   : > { %vm576_vm6 = vmor %vm574_vm5, %vm575_vm4 }
 0x152   : > { %v567_v20 = vsel %vm566_vm3, %v1985_v8, %v563_v16  ;;  %v570_v22 = vmul.f32 %v1987_v15, %v569_v18 }
 0x153   : > { %v578_v23 = vmul.f32 %v567_v20, %v2567_v17 }
 0x154   : > { %v571_v25 = vmul.f32 0.5, %v570_v22 }
 0x155   : > { %v583_v26 = vmul.f32 %v1976_v19, %v578_v23 }
 0x156   : > { %v572_v27 = vsub.f32 1.5, %v571_v25 }
 0x157   : > { %v588_v28 = vadd.f32 %v1977_v24, %v583_v26 }
 0x158   : > { %v573_v29 = vmul.f32 %v1987_v15, %v572_v27 }
 0x159   : > { %654 = vmatmul.f32.vlgmr.msra.gmra.mxu0 %v588_v28  ;;  %677 = vmatmul.f32.vlgmr.msra.gmra.mxu1 %v588_v28 }
 0x15a   : > { %v577_v30 = vsel %vm576_vm6, %v1987_v15, %v573_v29  ;;  %700 = vmatmul.f32.vlgmr.msra.gmra.mxu2 %v588_v28 }
 0x15b   : > { %v579_v31 = vmul.f32 %v577_v30, %v2573_v21 }
 0x15d   : > { %v584_v32 = vmul.f32 %v1976_v19, %v579_v31 }
 0x15f   : > { %v589_v17 = vadd.f32 %v1977_v24, %v584_v32 }
 0x161   : > { %657 = vmatmul.f32.gmra.mxu0 %v589_v17  ;;  %680 = vmatmul.f32.gmra.mxu1 %v589_v17 }
 0x162   : > { %703 = vmatmul.f32.gmra.mxu2 %v589_v17 }
 0x1d6   : > { %v2584_v33 = vpop.f32.mrf.mxu1  ;;  %v655_v36 = vpop.f32.mrf.mxu0 }
 0x1d7   : > { %v2591_v37 = vmul.f32 0.088388346, %v655_v36 }
 0x1dd   : > { %v2586_v34 = vpop.f32.mrf.mxu2 }
 0x1de   : > { %v681_v35 = vpop.f32.mrf.mxu1  ;;  %v658_v38 = vpop.f32.mrf.mxu0 }
 0x1df   : > { %1800 = vmatpush.xpose.msk.msra.mxu3 %vm718_vm7, %v681_v35  ;;  %v717_v39 = vmul.f32 0.088388346, %v658_v38 }
 0x1e3   : > { %1801 = vmatpush.xpose.msk.msra.mxu3 %vm718_vm7, %v2584_v33 }
 0x1e5   : > { %v2593_v21 = vpop.f32.mrf.mxu2 }
 0x1e6   : > { %1802 = vmatmul.msk.f32.vlgmr.msra.gmra.mxu3 %vm718_vm7, %v2591_v37 }
 0x1e7   : > { %797 = vmatpush.msrb.mxu3 %v2593_v21 }
 0x1e9   : > { %798 = vmatpush.msrb.mxu3 %v2586_v34 }
 0x1ee   : > { %1803 = vmatmul.msk.f32.gmra.mxu3 %vm718_vm7, %v717_v39 }
 0x269   : > { %v748_v46 = vpop.f32.mrf.mxu3 }
 0x26a   : > { %v749_v47 = vadd.f32 %v748_v46, %v2600_v44 }
 0x26c   : > { %v755_v48 = vsel %vm754_vm9, %v749_v47, -inf }
 0x26d   : > { %756 = vmax.xlane.f32.xlu2 %v755_v48 }
 0x271   : > { %v751_v50 = vpop.f32.mrf.mxu3 }
 0x272   : > { %v752_v51 = vadd.f32 %v751_v50, %v2604_v49 }
 0x274   : > { %v758_v52 = vsel %vm754_vm9, %v752_v51, -inf }
 0x275   : > { %759 = vmax.xlane.f32.xlu2 %v758_v52 }
 0x28d   : > { %816 = vrot.lane.b32.xlu2 %v681_v35, %s2328_s29 }
 0x295   : > { %1109 = vrot.lane.b32.xlu2 %v681_v35, %s2329_s25 }
 0x29d   : > { %977 = vrot.lane.b32.xlu2 %v681_v35, %s2330_s1 }
 0x2a5   : > { %975 = vrot.lane.b32.xlu2 %v2584_v33, %s2330_s1 }
 0x2ad   : > { %973 = vrot.lane.b32.xlu2 %v717_v39, %s2330_s1 }
 0x2e0   : > { %v757_v57 = vpop.xlane.xlu2 %756 }
 0x2e1   : > { %v761_v58 = vsub.f32 %v749_v47, %v757_v57 }
 0x2e3   : > { %v763_v59 = vmul.f32 1.442695, %v761_v58 }
 0x2e5   : > { %1988 = vpow2.f32 %v763_v59 }
 0x2e8   : > { %v760_v60 = vpop.xlane.xlu2 %759 }
 0x2e9   : > { %v762_v61 = vsub.f32 %v752_v51, %v760_v60 }
 0x2eb   : > { %v1989_v62 = vpop.eup %1988  ;;  %v765_v63 = vmul.f32 1.442695, %v762_v61 }
 0x2ec   : > { %v767_v2 = vsel %vm754_vm9, %v1989_v62, 0.0 }
 0x2ed   : > { %1990 = vpow2.f32 %v765_v63  ;;  %768 = vadd.xlane.f32.xlu0 %v767_v2 }
 0x2f0   : > { %v817_v3 = vpop.permute.xlu2 %816 }
 0x2f1   : > { %1806 = vmatpush.xpose.msk.msra.mxu3 %vm718_vm7, %v817_v3 }
 0x2f3   : > { %v1991_v4 = vpop.eup %1990 }
 0x2f4   : > { %v770_v5 = vsel %vm754_vm9, %v1991_v4, 0.0 }
 0x2f5   : > { %771 = vadd.xlane.f32.xlu1 %v770_v5 }
 0x2f8   : > { %v1110_v6 = vpop.permute.xlu2 %1109 }
 0x2f9   : > { %1824 = vmatpush.xpose.msk.msra.mxu2 %vm718_vm7, %v1110_v6 }
 0x300   : > { %v978_v11 = vpop.permute.xlu2 %977 }
 0x301   : > { %814 = vrot.lane.b32.xlu0 %v2584_v33, %s2328_s29 }
 0x308   : > { %v976_v16 = vpop.permute.xlu2 %975 }
 0x309   : > { %812 = vrot.lane.b32.xlu0 %v717_v39, %s2328_s29 }
 0x30e   : > { %810 = vrot.lane.b32.xlu1 %v2591_v37, %s2328_s29 }
 0x310   : > { %v974_v23 = vpop.permute.xlu2 %973 }
 0x311   : > { %1103 = vrot.lane.b32.xlu0 %v2591_v37, %s2329_s25 }
 0x316   : > { %1107 = vrot.lane.b32.xlu1 %v2584_v33, %s2329_s25 }
 0x319   : > { %1105 = vrot.lane.b32.xlu0 %v717_v39, %s2329_s25 }
 0x31e   : > { %971 = vrot.lane.b32.xlu1 %v2591_v37, %s2330_s1 }
 0x360   : > { %v769_v7 = vpop.xlane.xlu0 %768 }
 0x361   : > { %1992 = vrcp.f32 %v769_v7 }
 0x367   : > { %v1993_v8 = vpop.eup %1992 }
 0x368   : > { %v772_v9 = vpop.xlane.xlu1 %771  ;;  %v775_v10 = vmul.f32 %v1993_v8, %v1989_v62 }
 0x369   : > { %1994 = vrcp.f32 %v772_v9 }
 0x36a   : > { %1804 = vmatmul.msk.f32.vlgmr.msrb.gmra.mxu3 %vm754_vm9, %v775_v10 }
 0x36f   : > { %v1995_v12 = vpop.eup %1994 }
 0x370   : > { %v776_v13 = vmul.f32 %v1995_v12, %v1991_v4 }
 0x372   : > { %1805 = vmatmul.msk.f32.gmra.mxu3 %vm754_vm9, %v776_v13 }
 0x373   : > { %v815_v15 = vpop.permute.xlu0 %814 }
 0x374   : > { %1807 = vmatpush.xpose.msk.msra.mxu3 %vm718_vm7, %v815_v15 }
 0x378   : > { %1816 = vmatpush.xpose.msk.msrb.mxu3 %vm718_vm7, %v978_v11 }
 0x37b   : > { %v813_v19 = vpop.permute.xlu0 %812 }
 0x37c   : > { %1817 = vmatpush.xpose.msk.msrb.mxu3 %vm718_vm7, %v976_v16 }
 0x380   : > { %v811_v18 = vpop.permute.xlu1 %810 }
 0x381   : > { %1808 = vmatmul.msk.f32.vlgmr.msra.gmra.mxu3 %vm718_vm7, %v811_v18 }
 0x383   : > { %v1104_v26 = vpop.permute.xlu0 %1103 }
 0x388   : > { %v1108_v20 = vpop.permute.xlu1 %1107 }
 0x389   : > { %1809 = vmatmul.msk.f32.gmra.mxu3 %vm718_vm7, %v813_v19  ;;  %1825 = vmatpush.xpose.msk.msra.mxu2 %vm718_vm7, %v1108_v20 }
 0x38b   : > { %v1106_v28 = vpop.permute.xlu0 %1105 }
 0x390   : > { %v972_v22 = vpop.permute.xlu1 %971 }
 0x391   : > { %1818 = vmatmul.msk.f32.vlgmr.msrb.gmra.mxu3 %vm718_vm7, %v972_v22 }
 0x399   : > { %1819 = vmatmul.msk.f32.gmra.mxu3 %vm718_vm7, %v974_v23 }
 0x3ed   : > { %v800_v24 = vpop.f32.mrf.mxu3 }
 0x3ee   : > { %1814 = vmatmul.msk.f32.vlgmr.msrb.gmra.mxu2 %vm718_vm7, %v800_v24 }
 0x3f5   : > { %v803_v25 = vpop.f32.mrf.mxu3 }
 0x3f6   : > { %1815 = vmatmul.msk.f32.gmra.mxu2 %vm718_vm7, %v803_v25 }
 0x3fe   : > { %1826 = vmatmul.msk.f32.vlgmr.msra.gmra.mxu2 %vm718_vm7, %v1104_v26 }
 0x404   : > { %v843_v27 = vpop.f32.mrf.mxu3 }
 0x405   : > { %v844_v29 = vadd.f32 %v843_v27, %v2600_v44 }
 0x406   : > { %1827 = vmatmul.msk.f32.gmra.mxu2 %vm718_vm7, %v1106_v28 }
 0x407   : > { %v849_v30 = vsel %vm754_vm9, %v844_v29, -inf }
 0x408   : > { %850 = vmax.xlane.f32.xlu1 %v849_v30 }
 0x40c   : > { %v846_v31 = vpop.f32.mrf.mxu3 }
 0x40d   : > { %v847_v32 = vadd.f32 %v846_v31, %v2604_v49 }
 0x40f   : > { %v852_v17 = vsel %vm754_vm9, %v847_v32, -inf }
 0x410   : > { %853 = vmax.xlane.f32.xlu0 %v852_v17  ;;  %v912_v17 = vld [vmem:[#allocation8 + $0x38] sm:$0xff] }
 0x414   : > { %v1004_v33 = vpop.f32.mrf.mxu3 }
 0x415   : > { %v1005_v35 = vadd.f32 %v1004_v33, %v2600_v44  ;;  %v911_v33 = vld [vmem:[#allocation8 + $0x30] sm:$0xff] }
 0x417   : > { %v1010_v36 = vsel %vm754_vm9, %v1005_v35, -inf }
 0x418   : > { %1011 = vmax.xlane.f32.xlu1 %v1010_v36  ;;  %v909_v36 = vld [vmem:[#allocation8 + $0x20] sm:$0xff] }
 0x41c   : > { %v1007_v48 = vpop.f32.mrf.mxu3 }
 0x41d   : > { %v1008_v53 = vadd.f32 %v1007_v48, %v2604_v49 }
 0x41f   : > { %v1013_v58 = vsel %vm754_vm9, %v1008_v53, -inf }
 0x471   : > { %v2650_v37 = vpop.f32.mrf.mxu2 }
 0x479   : > { %v2652_v38 = vpop.f32.mrf.mxu2 }
 0x47b   : > { %v851_v39 = vpop.xlane.xlu1 %850 }
 0x47c   : > { %v855_v40 = vsub.f32 %v844_v29, %v851_v39  ;;  %v1071_v39 = vld [vmem:[#allocation8 + $0x58] sm:$0xff] }
 0x47e   : > { %v857_v41 = vmul.f32 1.442695, %v855_v40  ;;  %v1070_v40 = vld [vmem:[#allocation8 + $0x50] sm:$0xff] }
 0x480   : > { %1996 = vpow2.f32 %v857_v41 }
 0x481   : > { %v1136_v42 = vpop.f32.mrf.mxu2 }
 0x482   : > { %v1137_v43 = vadd.f32 %v1136_v42, %v2600_v44  ;;  %v1069_v42 = vld [vmem:[#allocation8 + $0x48] sm:$0xff] }
 0x483   : > { %v854_v45 = vpop.xlane.xlu0 %853 }
 0x484   : > { %v856_v46 = vsub.f32 %v847_v32, %v854_v45  ;;  %v1142_v47 = vsel %vm754_vm9, %v1137_v43, -inf }
 0x485   : > { %1143 = vmax.xlane.f32.xlu2 %v1142_v47 }
 0x486   : > { %v1997_v50 = vpop.eup %1996  ;;  %v859_v51 = vmul.f32 1.442695, %v856_v46 }
 0x487   : > { %v861_v52 = vsel %vm754_vm9, %v1997_v50, 0.0 }
 0x488   : > { %862 = vadd.xlane.f32.xlu1 %v861_v52  ;;  %1998 = vpow2.f32 %v859_v51 }
 0x489   : > { %v1139_v54 = vpop.f32.mrf.mxu2 }
 0x48a   : > { %v1140_v55 = vadd.f32 %v1139_v54, %v2604_v49  ;;  %v1961_v49 = vpack.i.bf16 %v2586_v34, %v2593_v21 }
 0x48b   : > { %v1012_v56 = vpop.xlane.xlu1 %1011 }
 0x48c   : > { %v1016_v57 = vsub.f32 %v1005_v35, %v1012_v56  ;;  %v1145_v44 = vsel %vm754_vm9, %v1140_v55, -inf  ;;  %v910_v35 = vld [vmem:[#allocation8 + $0x28] sm:$0xff] }
 0x48d   : > { %1146 = vmax.xlane.f32.xlu0 %v1145_v44  ;;  %1014 = vmax.xlane.f32.xlu2 %v1013_v58 }
 0x48e   : > { %v1018_v59 = vmul.f32 1.442695, %v1016_v57  ;;  %v1999_v60 = vpop.eup %1998 }
 0x48f   : > { %v864_v61 = vsel %vm754_vm9, %v1999_v60, 0.0 }
 0x490   : > { %2000 = vpow2.f32 %v1018_v59  ;;  %v1203_v59 = vld [vmem:[#allocation8 + $0x78] sm:$0xff] }
 0x495   : > { %865 = vadd.xlane.f32.xlu2 %v864_v61  ;;  %v1201_v61 = vld [vmem:[#allocation8 + $0x68] sm:$0xff] }
 0x496   : > { %v2001_v62 = vpop.eup %2000 }
 0x497   : > { %v1022_v63 = vsel %vm754_vm9, %v2001_v62, 0.0 }
 0x49d   : > { %1023 = vadd.xlane.f32.xlu2 %v1022_v63 }
 0x4a1   : > { %1962 = vrot.lane.b32.xlu0 %v1961_v49, %s2328_s29  ;;  %s2823_s29 = sld [smem:[#allocation26_spill]] }
 0x4a7   : > { %s2254_s12 = scalar_lea.hbm %s2823_s29, 32 }
 0x4a9   : > { %1972 = vrot.lane.b32.xlu0 %v1961_v49, %s2330_s1  ;;  %s528_s1 = scalar_lea.vmem [#allocation14], %s1792_s8 }
 0x4aa   : > { %s1646_s26 = sshll.u32 %s528_s1, 4  ;;  %s1647_s26 = int_to_ptr.vmem [resolvable:$true] %s1646_s26 }
 0x4f8   : > { %v1144_v2 = vpop.xlane.xlu2 %1143 }
 0x4f9   : > { %v1148_v3 = vsub.f32 %v1137_v43, %v1144_v2  ;;  %v1068_v43 = vld [vmem:[#allocation8 + $0x40] sm:$0xff] }
 0x4fb   : > { %v1150_v4 = vmul.f32 1.442695, %v1148_v3  ;;  %v863_v12 = vpop.xlane.xlu1 %862 }
 0x4fd   : > { %2002 = vpow2.f32 %v1150_v4 }
 0x500   : > { %v1147_v5 = vpop.xlane.xlu0 %1146  ;;  %v1015_v6 = vpop.xlane.xlu2 %1014 }
 0x501   : > { %v1149_v7 = vsub.f32 %v1140_v55, %v1147_v5  ;;  %v1017_v10 = vsub.f32 %v1008_v53, %v1015_v6 }
 0x503   : > { %v2667_v8 = vpop.eup %2002  ;;  %v1152_v9 = vmul.f32 1.442695, %v1149_v7  ;;  %v1020_v34 = vmul.f32 1.442695, %v1017_v10 }
 0x504   : > { %v1154_v11 = vsel %vm754_vm9, %v2667_v8, 0.0 }
 0x505   : > { %2004 = vpow2.f32 %v1152_v9  ;;  %1155 = vadd.xlane.f32.xlu1 %v1154_v11 }
 0x506   : > { %2006 = vpow2.f32 %v1020_v34 }
 0x507   : > { %2008 = vrcp.f32 %v863_v12 }
 0x508   : > { %v866_v21 = vpop.xlane.xlu2 %865 }
 0x509   : > { %2010 = vrcp.f32 %v866_v21 }
 0x50b   : > { %v2671_v13 = vpop.eup %2004 }
 0x50c   : > { %v1157_v15 = vsel %vm754_vm9, %v2671_v13, 0.0  ;;  %v2007_v16 = vpop.eup %2006 }
 0x50d   : > { %1158 = vadd.xlane.f32.xlu2 %v1157_v15  ;;  %v2009_v18 = vpop.eup %2008  ;;  %v1025_v23 = vsel %vm754_vm9, %v2007_v16, 0.0 }
 0x50e   : > { %v869_v26 = vmul.f32 %v2009_v18, %v1997_v50 }
 0x50f   : > { %v2011_v22 = vpop.eup %2010 }
 0x510   : > { %v1024_v19 = vpop.xlane.xlu2 %1023  ;;  %v870_v27 = vmul.f32 %v2011_v22, %v1999_v60  ;;  %v1202_v60 = vld [vmem:[#allocation8 + $0x70] sm:$0xff] }
 0x511   : > { %2012 = vrcp.f32 %v1024_v19  ;;  %v1355_v19 = vld [vmem:[#allocation11 + $0x1e0] sm:$0xff]  ;;  %v1357_v22 = vld [vmem:[#allocation11 + $0x1f0] sm:$0xff] }
 0x513   : > { %v1963_v20 = vpop.permute.xlu0 %1962 }
 0x514   : > { %v1964_v24 = vunpack.i.l.bf16 %v1963_v20  ;;  %v1965_v25 = vunpack.i.h.bf16 %v1963_v20  ;;  %v1356_v20 = vld [vmem:[#allocation11 + $0x1e8] sm:$0xff] }
 0x515   : > { %1026 = vadd.xlane.f32.xlu2 %v1025_v23  ;;  %1392 = vmatpush.msrb.mxu2 %v1356_v20  ;;  %v1351_v23 = vld [vmem:[#allocation11 + $0x1c0] sm:$0xff]  ;;  %v1305_v20 = vld [vmem:[#allocation11 + $0x50] sm:$0xff] }
 0x516   : > { %899 = vmatpush.msrb.mxu0 %v1964_v24  ;;  %1839 = vmatpush.msrb.mxu1 %v1964_v24  ;;  %v1353_v24 = vld [vmem:[#allocation11 + $0x1d0] sm:$0xff] }
 0x517   : > { %v2013_v29 = vpop.eup %2012 }
 0x518   : > { %900 = vmatpush.msrb.mxu0 %v1965_v25  ;;  %1840 = vmatpush.msrb.mxu1 %v1965_v25  ;;  %v1030_v32 = vmul.f32 %v2013_v29, %v2001_v62  ;;  %v1200_v62 = vld [vmem:[#allocation8 + $0x60] sm:$0xff] }
 0x519   : > { %1810 = vmatmul.msk.f32.vlgmr.msrb.gmra.mxu0 %vm754_vm9, %v869_v26  ;;  %1811 = vmatmul.msk.f32.vlgmr.msrb.gmra.mxu1 %vm754_vm9, %v870_v27  ;;  %v1354_v25 = vld [vmem:[#allocation11 + $0x1d8] sm:$0xff] }
 0x51a   : > { %931 = vmatpush.msra.mxu1 %v912_v17  ;;  %v1347_v17 = vld [vmem:[#allocation11 + $0x1a0] sm:$0xff] }
 0x51b   : > { %v1973_v28 = vpop.permute.xlu0 %1972 }
 0x51c   : > { %v1974_v30 = vunpack.i.l.bf16 %v1973_v28  ;;  %v1975_v31 = vunpack.i.h.bf16 %v1973_v28  ;;  %932 = vmatpush.msra.mxu1 %v911_v33  ;;  %v1348_v33 = vld [vmem:[#allocation11 + $0x1a8] sm:$0xff] }
 0x51e   : > { %1058 = vmatpush.msra.mxu0 %v1974_v30  ;;  %1967 = vrot.lane.b32.xlu1 %v1961_v49, %s2329_s25  ;;  %s1645_s25 = scalar_lea.hbm %s2823_s29, %s1838_s16 }
 0x51f   : > { %933 = vmatpush.msra.mxu1 %v910_v35  ;;  %v1349_v35 = vld [vmem:[#allocation11 + $0x1b0] sm:$0xff]  ;;  %s1648_s20 = sshll.u32 %s1645_s25, 4  ;;  %s1649_s20 = int_to_ptr.hbm [resolvable:$true] %s1648_s20 }
 0x520   : > { %1059 = vmatpush.msra.mxu0 %v1975_v31  ;;  %s2248_s27 = sshra.s32 %s1649_s20, 4  ;;  %s2249_s27 = int_to_ptr.hbm [resolvable:$true] %s2248_s27 }
 0x521   : > { %1820 = vmatmul.msk.f32.vlgmr.msra.gmra.mxu0 %vm754_vm9, %v1030_v32  ;;  %934 = vmatpush.msra.mxu1 %v909_v36  ;;  %v1350_v36 = vld [vmem:[#allocation11 + $0x1b8] sm:$0xff]  ;;  %s2250_s19 = scalar_lea.hbm %s2249_s27, 16  ;;  %p2255_p12 = scmp.lt.s32.totalorder %s2249_s27, %s2823_s29 }
 0x522   : > { %1222 = vmatpush.msrb.mxu0 %v1203_v59  ;;  %v1330_v59 = vld [vmem:[#allocation11 + $0x118] sm:$0xff]  ;;  %p2251_p1 = scmp.ne.s32.totalorder %s2249_s27, %s2250_s19  ;;  %p2256_p7 = scmp.lt.s32.totalorder %s2254_s12, %s2250_s19 }
 0x523   : > { %1090 = vmatpush.msrb.mxu1 %v1071_v39  ;;  %v1343_v39 = vld [vmem:[#allocation11 + $0x180] sm:$0xff] }
 0x524   : > { %1223 = vmatpush.msrb.mxu0 %v1202_v60  ;;  %v1323_v60 = vld [vmem:[#allocation11 + $0xe0] sm:$0xff]  ;;  %p2252_p3 = pnand %p2251_p1, %p2501_p5  ;;  %p2257_p8 = por %p2256_p7, %p2255_p12 }
 0x525   : > { %1091 = vmatpush.msrb.mxu1 %v1070_v40  ;;  %v1344_v40 = vld [vmem:[#allocation11 + $0x188] sm:$0xff] }
 0x526   : > { %1224 = vmatpush.msrb.mxu0 %v1201_v61  ;;  %v1324_v61 = vld [vmem:[#allocation11 + $0xe8] sm:$0xff]  ;;  %p2253_p4 = pneg %p2252_p3 }
 0x527   : > { %1092 = vmatpush.msrb.mxu1 %v1069_v42  ;;  %v1346_v42 = vld [vmem:[#allocation11 + $0x198] sm:$0xff] }
 0x528   : > { %1225 = vmatpush.msrb.mxu0 %v1200_v62  ;;  %v1325_v62 = vld [vmem:[#allocation11 + $0xf0] sm:$0xff]  ;;  %p2258_p9 = pnand %p2257_p8, %p2253_p4 }
 0x529   : > { %1093 = vmatpush.msrb.mxu1 %v1068_v43  ;;  %v1339_v43 = vld [vmem:[#allocation11 + $0x160] sm:$0xff] }
 0x578   : > { %v1156_v45 = vpop.xlane.xlu1 %1155 }
 0x580   : > { %v1159_v41 = vpop.xlane.xlu2 %1158 }
 0x588   : > { %v1027_v46 = vpop.xlane.xlu2 %1026 }
 0x589   : > { %2014 = vrcp.f32 %v1027_v46  ;;  %v1341_v46 = vld [vmem:[#allocation11 + $0x170] sm:$0xff] }
 0x58a   : > { %2016 = vrcp.f32 %v1156_v45  ;;  %v1340_v45 = vld [vmem:[#allocation11 + $0x168] sm:$0xff] }
 0x58b   : > { %2018 = vrcp.f32 %v1159_v41  ;;  %v1345_v41 = vld [vmem:[#allocation11 + $0x190] sm:$0xff] }
 0x58f   : > { %v2015_v47 = vpop.eup %2014 }
 0x590   : > { %v1968_v48 = vpop.permute.xlu1 %1967  ;;  %v1031_v50 = vmul.f32 %v2015_v47, %v2007_v16  ;;  %v2017_v51 = vpop.eup %2016  ;;  %v1342_v47 = vld [vmem:[#allocation11 + $0x178] sm:$0xff] }
 0x591   : > { %v1969_v52 = vunpack.i.l.bf16 %v1968_v48  ;;  %v1970_v53 = vunpack.i.h.bf16 %v1968_v48  ;;  %v1162_v54 = vmul.f32 %v2017_v51, %v2667_v8  ;;  %v2019_v56 = vpop.eup %2018  ;;  %v1978_v8 = vld [vmem:[%s2790_s5] ss:$0 sm:$0xff]  ;;  %v1335_v48 = vld [vmem:[#allocation11 + $0x140] sm:$0xff]  ;;  %v1337_v51 = vld [vmem:[#allocation11 + $0x150] sm:$0xff] }
 0x592   : > { %1821 = vmatmul.msk.f32.gmra.mxu0 %vm754_vm9, %v1031_v50  ;;  %v1163_v57 = vmul.f32 %v2019_v56, %v2671_v13  ;;  %v1336_v50 = vld [vmem:[#allocation11 + $0x148] sm:$0xff]  ;;  %v1334_v56 = vld [vmem:[#allocation11 + $0x138] sm:$0xff] }
 0x593   : > { %1190 = vmatpush.msra.mxu3 %v1969_v52  ;;  %v1338_v52 = vld [vmem:[#allocation11 + $0x158] sm:$0xff] }
 0x595   : > { %1191 = vmatpush.msra.mxu3 %v1970_v53  ;;  %v1331_v53 = vld [vmem:[#allocation11 + $0x120] sm:$0xff] }
 0x596   : > { %v902_v55 = vpop.f32.mrf.mxu0  ;;  %1828 = vmatmul.msk.f32.vlgmr.msra.gmra.mxu3 %vm754_vm9, %v1162_v54  ;;  %v905_v44 = vpop.f32.mrf.mxu1  ;;  %v1332_v54 = vld [vmem:[#allocation11 + $0x128] sm:$0xff] }
 0x597   : > { %1812 = vmatmul.msk.f32.vlgmr.msra.gmra.mxu1 %vm718_vm7, %v902_v55  ;;  %1415 = vmatpush.msrb.mxu3 %v1357_v22  ;;  %v1333_v55 = vld [vmem:[#allocation11 + $0x130] sm:$0xff]  ;;  %v1306_v22 = vld [vmem:[#allocation11 + $0x58] sm:$0xff] }
 0x598   : > { %1369 = vmatpush.msra.mxu1 %v1355_v19  ;;  %v1304_v19 = vld [vmem:[#allocation11 + $0x48] sm:$0xff] }
 0x599   : > { %1416 = vmatpush.msrb.mxu3 %v1353_v24  ;;  %v1302_v24 = vld [vmem:[#allocation11 + $0x38] sm:$0xff] }
 0x59a   : > { %1370 = vmatpush.msra.mxu1 %v1351_v23  ;;  %v1300_v23 = vld [vmem:[#allocation11 + $0x28] sm:$0xff] }
 0x59b   : > { %1417 = vmatpush.msrb.mxu3 %v1349_v35  ;;  %v1483_v35 = vld [vmem:[#allocation13 + $0x70] sm:$0xff] }
 0x59c   : > { %1371 = vmatpush.msra.mxu1 %v1347_v17  ;;  %v1484_v17 = vld [vmem:[#allocation13 + $0x78] sm:$0xff] }
 0x59d   : > { %1418 = vmatpush.msrb.mxu3 %v1345_v41  ;;  %v1530_v41 = vld [vmem:[#allocation13 + $0x1e8] sm:$0xff] }
 0x59e   : > { %1829 = vmatmul.msk.f32.gmra.mxu3 %vm754_vm9, %v1163_v57  ;;  %v1061_v58 = vpop.f32.mrf.mxu0  ;;  %1372 = vmatpush.msra.mxu1 %v1343_v39  ;;  %v1327_v57 = vld [vmem:[#allocation11 + $0x100] sm:$0xff]  ;;  %v1482_v39 = vld [vmem:[#allocation13 + $0x68] sm:$0xff] }
 0x59f   : > { %1813 = vmatmul.msk.f32.gmra.mxu1 %vm718_vm7, %v905_v44  ;;  %1419 = vmatpush.msrb.mxu3 %v1341_v46  ;;  %v1328_v44 = vld [vmem:[#allocation11 + $0x108] sm:$0xff]  ;;  %v1499_v46 = vld [vmem:[#allocation13 + $0xf0] sm:$0xff] }
 0x5a0   : > { %1373 = vmatpush.msra.mxu1 %v1339_v43  ;;  %v1516_v43 = vld [vmem:[#allocation13 + $0x178] sm:$0xff] }
 0x5a1   : > { %1420 = vmatpush.msrb.mxu3 %v1337_v51 }
 0x5a2   : > { %1374 = vmatpush.msra.mxu1 %v1335_v48  ;;  %v1529_v48 = vld [vmem:[#allocation13 + $0x1e0] sm:$0xff] }
 0x5a3   : > { %1421 = vmatpush.msrb.mxu3 %v1333_v55 }
 0x5a4   : > { %1375 = vmatpush.msra.mxu1 %v1331_v53  ;;  %v1498_v53 = vld [vmem:[#allocation13 + $0xe8] sm:$0xff] }
 0x5a6   : > { %1376 = vmatpush.msra.mxu1 %v1327_v57  ;;  %v1497_v57 = vld [vmem:[#allocation13 + $0xe0] sm:$0xff] }
 0x5a7   : > { %1822 = vmatmul.msk.f32.vlgmr.msrb.gmra.mxu1 %vm718_vm7, %v1061_v58  ;;  %v1329_v58 = vld [vmem:[#allocation11 + $0x110] sm:$0xff] }
 0x5a8   : > { %1422 = vmatpush.msrb.mxu3 %v1329_v58  ;;  %1377 = vmatpush.msra.mxu1 %v1323_v60  ;;  %v1527_v60 = vld [vmem:[#allocation13 + $0x1d0] sm:$0xff] }
 0x5aa   : > { %1423 = vmatpush.msrb.mxu3 %v1325_v62  ;;  %v1512_v62 = vld [vmem:[#allocation13 + $0x158] sm:$0xff] }
 0x60f   : > { %v1064_v63 = vpop.f32.mrf.mxu0 }
 0x610   : > { %1823 = vmatmul.msk.f32.gmra.mxu1 %vm718_vm7, %v1064_v63  ;;  %v1326_v63 = vld [vmem:[#allocation11 + $0xf8] sm:$0xff] }
 0x614   : > { %v936_v3 = vpop.f32.mrf.mxu1 }
 0x615   : > { %v966_v6 = vadd.f32 %v2650_v37, %v936_v3  ;;  %v1321_v3 = vld [vmem:[#allocation11 + $0xd0] sm:$0xff] }
 0x616   : > { %1424 = vmatpush.msrb.mxu3 %v1321_v3  ;;  %v1495_v3 = vld [vmem:[#allocation13 + $0xd0] sm:$0xff] }
 0x619   : > { %v1193_v49 = vpop.f32.mrf.mxu3 }
 0x61a   : > { %1830 = vmatmul.msk.f32.vlgmr.msrb.gmra.mxu0 %vm718_vm7, %v1193_v49  ;;  %v1319_v49 = vld [vmem:[#allocation11 + $0xc0] sm:$0xff] }
 0x61b   : > { %1378 = vmatpush.msra.mxu1 %v1319_v49  ;;  %v1478_v49 = vld [vmem:[#allocation13 + $0x48] sm:$0xff] }
 0x61c   : > { %v939_v4 = vpop.f32.mrf.mxu1 }
 0x61d   : > { %v969_v21 = vadd.f32 %v2652_v38, %v939_v4  ;;  %v1358_v38 = vld [vmem:[#allocation11 + $0x1f8] sm:$0xff] }
 0x61e   : > { %1438 = vmatpush.msra.mxu0 %v1358_v38  ;;  %v1322_v4 = vld [vmem:[#allocation11 + $0xd8] sm:$0xff]  ;;  %v1299_v38 = vld [vmem:[#allocation11 + $0x20] sm:$0xff] }
 0x620   : > { %1439 = vmatpush.msra.mxu0 %v1354_v25  ;;  %v1295_v25 = vld [vmem:[#allocation11] sm:$0xff] }
 0x621   : > { %v1196_v2 = vpop.f32.mrf.mxu3 }
 0x622   : > { %1831 = vmatmul.msk.f32.gmra.mxu0 %vm718_vm7, %v1196_v2  ;;  %v1320_v2 = vld [vmem:[#allocation11 + $0xc8] sm:$0xff] }
 0x623   : > { %1440 = vmatpush.msra.mxu0 %v1350_v36  ;;  %v1531_v36 = vld [vmem:[#allocation13 + $0x1f0] sm:$0xff] }
 0x624   : > { %v1095_v5 = vpop.f32.mrf.mxu1 }
 0x625   : > { %v1101_v7 = vadd.f32 %v1095_v5, %v966_v6  ;;  %1441 = vmatpush.msra.mxu0 %v1346_v42  ;;  %v1315_v5 = vld [vmem:[#allocation11 + $0xa0] sm:$0xff]  ;;  %v1316_v6 = vld [vmem:[#allocation11 + $0xa8] sm:$0xff]  ;;  %v1500_v42 = vld [vmem:[#allocation13 + $0xf8] sm:$0xff] }
 0x626   : > { %1379 = vmatpush.msra.mxu1 %v1315_v5 }
 0x627   : > { %1442 = vmatpush.msra.mxu0 %v1342_v47  ;;  %v1481_v47 = vld [vmem:[#allocation13 + $0x60] sm:$0xff] }
 0x629   : > { %1443 = vmatpush.msra.mxu0 %v1338_v52 }
 0x62b   : > { %1444 = vmatpush.msra.mxu0 %v1334_v56  ;;  %v1528_v56 = vld [vmem:[#allocation13 + $0x1d8] sm:$0xff] }
 0x62d   : > { %1445 = vmatpush.msra.mxu0 %v1330_v59  ;;  %v1479_v59 = vld [vmem:[#allocation13 + $0x50] sm:$0xff] }
 0x62f   : > { %1446 = vmatpush.msra.mxu0 %v1326_v63 }
 0x631   : > { %1447 = vmatpush.msra.mxu0 %v1322_v4  ;;  %v1511_v4 = vld [vmem:[#allocation13 + $0x150] sm:$0xff] }
 0x68d   : > { %v1098_v34 = vpop.f32.mrf.mxu1 }
 0x68e   : > { %v1102_v13 = vadd.f32 %v1098_v34, %v969_v21  ;;  %v1314_v34 = vld [vmem:[#allocation11 + $0x98] sm:$0xff]  ;;  %v1307_v21 = vld [vmem:[#allocation11 + $0x60] sm:$0xff] }
 0x697   : > { %v1227_v9 = vpop.f32.mrf.mxu0 }
 0x698   : > { %v1233_v10 = vadd.f32 %v1227_v9, %v1101_v7  ;;  %v1317_v7 = vld [vmem:[#allocation11 + $0xb0] sm:$0xff]  ;;  %v1311_v9 = vld [vmem:[#allocation11 + $0x80] sm:$0xff] }
 0x699   : > { %1425 = vmatpush.msrb.mxu3 %v1317_v7  ;;  %1380 = vmatpush.msra.mxu1 %v1311_v9  ;;  %v1525_v7 = vld [vmem:[#allocation13 + $0x1c0] sm:$0xff]  ;;  %v1494_v9 = vld [vmem:[#allocation13 + $0xc8] sm:$0xff] }
 0x69a   : > { %v1239_v11 = vadd.f32 %v1978_v8, %v1233_v10  ;;  %v1312_v10 = vld [vmem:[#allocation11 + $0x88] sm:$0xff] }
 0x69b   : > { %1381 = vmatpush.msra.mxu1 %v1307_v21  ;;  %v1979_v21 = vld [vmem:[%s2791_s6] ss:$0 sm:$0xff] }
 0x69c   : > { %v2697_v12 = vadd.f32 %v1239_v11, %v2557_v0  ;;  %v1352_v0 = vld [vmem:[#allocation11 + $0x1c8] sm:$0xff]  ;;  %v1313_v11 = vld [vmem:[#allocation11 + $0x90] sm:$0xff] }
 0x69d   : > { %1393 = vmatpush.msrb.mxu2 %v1352_v0  ;;  %1426 = vmatpush.msrb.mxu3 %v1313_v11  ;;  %v1301_v0 = vld [vmem:[#allocation11 + $0x30] sm:$0xff] }
 0x69e   : > { %1245 = vadd.xlane.f32.xlu0 %v2697_v12 }
 0x69f   : > { %v1230_v15 = vpop.f32.mrf.mxu0  ;;  %1394 = vmatpush.msrb.mxu2 %v1348_v33  ;;  %v1532_v33 = vld [vmem:[#allocation13 + $0x1f8] sm:$0xff] }
 0x6a0   : > { %v1234_v16 = vadd.f32 %v1230_v15, %v1102_v13  ;;  %v1308_v13 = vld [vmem:[#allocation11 + $0x68] sm:$0xff]  ;;  %v1309_v15 = vld [vmem:[#allocation11 + $0x70] sm:$0xff] }
 0x6a1   : > { %1395 = vmatpush.msrb.mxu2 %v1344_v40  ;;  %1427 = vmatpush.msrb.mxu3 %v1309_v15  ;;  %v1524_v15 = vld [vmem:[#allocation13 + $0x1b8] sm:$0xff] }
 0x6a2   : > { %v1240_v37 = vadd.f32 %v1978_v8, %v1234_v16  ;;  %v1318_v8 = vld [vmem:[#allocation11 + $0xb8] sm:$0xff] }
 0x6a3   : > { %1396 = vmatpush.msrb.mxu2 %v1340_v45  ;;  %1448 = vmatpush.msra.mxu0 %v1318_v8  ;;  %v1310_v16 = vld [vmem:[#allocation11 + $0x78] sm:$0xff] }
 0x6a4   : > { %v2701_v18 = vadd.f32 %v1240_v37, %v2560_v1  ;;  %v1303_v37 = vld [vmem:[#allocation11 + $0x40] sm:$0xff]  ;;  %1428 = vmatpush.msrb.mxu3 %v1305_v20 }
 0x6a5   : > { %1397 = vmatpush.msrb.mxu2 %v1336_v50  ;;  %1449 = vmatpush.msra.mxu0 %v1314_v34  ;;  %v1515_v50 = vld [vmem:[#allocation13 + $0x170] sm:$0xff] }
 0x6a6   : > { %1247 = vadd.xlane.f32.xlu2 %v2701_v18  ;;  %1382 = vmatpush.msra.mxu1 %v1303_v37  ;;  %v1509_v37 = vld [vmem:[#allocation13 + $0x140] sm:$0xff] }
 0x6a7   : > { %1398 = vmatpush.msrb.mxu2 %v1332_v54  ;;  %1450 = vmatpush.msra.mxu0 %v1310_v16  ;;  %v1514_v54 = vld [vmem:[#allocation13 + $0x168] sm:$0xff]  ;;  %v1493_v16 = vld [vmem:[#allocation13 + $0xc0] sm:$0xff] }
 0x6a8   : > { %1383 = vmatpush.msra.mxu1 %v1299_v38  ;;  %1429 = vmatpush.msrb.mxu3 %v1301_v0  ;;  %v1523_v38 = vld [vmem:[#allocation13 + $0x1b0] sm:$0xff]  ;;  %v1980_v0 = vld [vmem:[#allocation10] ss:$0 sm:$0xff] }
 0x6a9   : > { %1399 = vmatpush.msrb.mxu2 %v1328_v44  ;;  %1451 = vmatpush.msra.mxu0 %v1306_v22  ;;  %v1513_v44 = vld [vmem:[#allocation13 + $0x160] sm:$0xff]  ;;  %v1475_v22 = vld [vmem:[#allocation13 + $0x30] sm:$0xff] }
 0x6aa   : > { %1384 = vmatpush.msra.mxu1 %v1295_v25  ;;  %v1508_v25 = vld [vmem:[#allocation13 + $0x138] sm:$0xff] }
 0x6ab   : > { %1400 = vmatpush.msrb.mxu2 %v1324_v61  ;;  %1452 = vmatpush.msra.mxu0 %v1302_v24  ;;  %v1496_v61 = vld [vmem:[#allocation13 + $0xd8] sm:$0xff] }
 0x6ac   : > { %1537 = vmatpush.msrb.mxu1 %v1484_v17  ;;  %v1492_v24 = vld [vmem:[#allocation13 + $0xb8] sm:$0xff] }
 0x6ad   : > { %1401 = vmatpush.msrb.mxu2 %v1320_v2  ;;  %v1526_v2 = vld [vmem:[#allocation13 + $0x1c8] sm:$0xff] }
 0x6ae   : > { %1538 = vmatpush.msrb.mxu1 %v1483_v35  ;;  %v1473_v35 = vld [vmem:[#allocation13 + $0x20] sm:$0xff] }
 0x6af   : > { %1402 = vmatpush.msrb.mxu2 %v1316_v6  ;;  %v1477_v6 = vld [vmem:[#allocation13 + $0x40] sm:$0xff] }
 0x6b0   : > { %1539 = vmatpush.msrb.mxu1 %v1482_v39 }
 0x6b1   : > { %1403 = vmatpush.msrb.mxu2 %v1312_v10  ;;  %v1510_v10 = vld [vmem:[#allocation13 + $0x148] sm:$0xff] }
 0x6b2   : > { %1540 = vmatpush.msrb.mxu1 %v1481_v47  ;;  %v1490_v47 = vld [vmem:[#allocation13 + $0xa8] sm:$0xff] }
 0x6b3   : > { %1404 = vmatpush.msrb.mxu2 %v1308_v13  ;;  %v1476_v13 = vld [vmem:[#allocation13 + $0x38] sm:$0xff] }
 0x6b5   : > { %1405 = vmatpush.msrb.mxu2 %v1304_v19 }
 0x6b7   : > { %1406 = vmatpush.msrb.mxu2 %v1300_v23 }
 0x711   : > { %v1246_v1 = vpop.xlane.xlu0 %1245 }
 0x712   : > { %v1249_v26 = vmul.f32 %v1246_v1, %v2563_v14  ;;  %v1296_v1 = vld [vmem:[#allocation11 + $0x8] sm:$0xff] }
 0x713   : > { %1407 = vmatpush.msrb.mxu2 %v1296_v1 }
 0x714   : > { %v2706_v27 = vsub.f32 %v2697_v12, %v1249_v26  ;;  %v1297_v26 = vld [vmem:[#allocation11 + $0x10] sm:$0xff] }
 0x715   : > { %1430 = vmatpush.msrb.mxu3 %v1297_v26  ;;  %1560 = vmatpush.msra.mxu2 %v1500_v42  ;;  %v1474_v26 = vld [vmem:[#allocation13 + $0x28] sm:$0xff] }
 0x716   : > { %v1253_v28 = vmul.f32 %v2706_v27, %v2706_v27 }
 0x717   : > { %1583 = vmatpush.msra.mxu3 %v1516_v43  ;;  %1561 = vmatpush.msra.mxu2 %v1499_v46  ;;  %v1471_v46 = vld [vmem:[#allocation13 + $0x10] sm:$0xff] }
 0x718   : > { %1255 = vadd.xlane.f32.xlu1 %v1253_v28  ;;  %v1298_v28 = vld [vmem:[#allocation11 + $0x18] sm:$0xff] }
 0x719   : > { %v1248_v29 = vpop.xlane.xlu2 %1247  ;;  %1453 = vmatpush.msra.mxu0 %v1298_v28  ;;  %1584 = vmatpush.msra.mxu3 %v1515_v50  ;;  %v1522_v28 = vld [vmem:[#allocation13 + $0x1a8] sm:$0xff]  ;;  %v1519_v50 = vld [vmem:[#allocation13 + $0x190] sm:$0xff] }
 0x71a   : > { %v1250_v30 = vmul.f32 %v1248_v29, %v2563_v14  ;;  %1562 = vmatpush.msra.mxu2 %v1498_v53  ;;  %v1518_v53 = vld [vmem:[#allocation13 + $0x188] sm:$0xff] }
 0x71b   : > { %1606 = vmatpush.msrb.mxu0 %v1532_v33  ;;  %1585 = vmatpush.msra.mxu3 %v1514_v54  ;;  %v1469_v54 = vld [vmem:[#allocation13] sm:$0xff] }
 0x71c   : > { %v2712_v31 = vsub.f32 %v2701_v18, %v1250_v30  ;;  %1563 = vmatpush.msra.mxu2 %v1497_v57  ;;  %v1487_v57 = vld [vmem:[#allocation13 + $0x90] sm:$0xff] }
 0x71d   : > { %1607 = vmatpush.msrb.mxu0 %v1531_v36  ;;  %1586 = vmatpush.msra.mxu3 %v1513_v44  ;;  %v1521_v36 = vld [vmem:[#allocation13 + $0x1a0] sm:$0xff]  ;;  %v1503_v44 = vld [vmem:[#allocation13 + $0x110] sm:$0xff] }
 0x71e   : > { %v1254_v32 = vmul.f32 %v2712_v31, %v2712_v31  ;;  %1564 = vmatpush.msra.mxu2 %v1496_v61  ;;  %v1501_v61 = vld [vmem:[#allocation13 + $0x100] sm:$0xff] }
 0x71f   : > { %1608 = vmatpush.msrb.mxu0 %v1530_v41  ;;  %1587 = vmatpush.msra.mxu3 %v1512_v62  ;;  %v1520_v41 = vld [vmem:[#allocation13 + $0x198] sm:$0xff] }
 0x720   : > { %1257 = vadd.xlane.f32.xlu2 %v1254_v32  ;;  %1565 = vmatpush.msra.mxu2 %v1495_v3  ;;  %v1359_v62 = vld [vmem:[%s2794_s9] sm:$0xf] }
 0x721   : > { %1609 = vmatpush.msrb.mxu0 %v1529_v48  ;;  %1588 = vmatpush.msra.mxu3 %v1511_v4  ;;  %v1506_v48 = vld [vmem:[#allocation13 + $0x128] sm:$0xff] }
 0x722   : > { %1566 = vmatpush.msra.mxu2 %v1494_v9  ;;  %v1363_v9 = vperm.slane %v1359_v62, 2 }
 0x723   : > { %1610 = vmatpush.msrb.mxu0 %v1528_v56  ;;  %1589 = vmatpush.msra.mxu3 %v1510_v10  ;;  %v1517_v56 = vld [vmem:[#allocation13 + $0x180] sm:$0xff] }
 0x724   : > { %1567 = vmatpush.msra.mxu2 %v1493_v16 }
 0x725   : > { %1611 = vmatpush.msrb.mxu0 %v1527_v60  ;;  %1590 = vmatpush.msra.mxu3 %v1509_v37  ;;  %v1485_v60 = vld [vmem:[#allocation13 + $0x80] sm:$0xff] }
 0x726   : > { %1568 = vmatpush.msra.mxu2 %v1492_v24 }
 0x727   : > { %1612 = vmatpush.msrb.mxu0 %v1526_v2  ;;  %1591 = vmatpush.msra.mxu3 %v1508_v25 }
 0x729   : > { %1613 = vmatpush.msrb.mxu0 %v1525_v7  ;;  %v1362_v7 = vperm.slane %v1359_v62, 1 }
 0x72b   : > { %1614 = vmatpush.msrb.mxu0 %v1524_v15 }
 0x72d   : > { %1615 = vmatpush.msrb.mxu0 %v1523_v38 }
 0x72f   : > { %1616 = vmatpush.msrb.mxu0 %v1522_v28 }
 0x731   : > { %1617 = vmatpush.msrb.mxu0 %v1521_v36 }
 0x733   : > { %1618 = vmatpush.msrb.mxu0 %v1520_v41 }
 0x735   : > { %1619 = vmatpush.msrb.mxu0 %v1519_v50 }
 0x737   : > { %1620 = vmatpush.msrb.mxu0 %v1518_v53 }
 0x739   : > { %1621 = vmatpush.msrb.mxu0 %v1517_v56 }
 0x78b   : > { %v1256_v29 = vpop.xlane.xlu1 %1255 }
 0x78c   : > { %v1259_v30 = vmul.f32 %v1256_v29, %v2563_v14 }
 0x78e   : > { %v2717_v32 = vadd.f32 1e-05, %v1259_v30  ;;  %v1491_v30 = vld [vmem:[#allocation13 + $0xb0] sm:$0xff] }
 0x78f   : > { %1569 = vmatpush.msra.mxu2 %v1491_v30 }
 0x790   : > { %2020 = vrsqrt.f32 %v2717_v32  ;;  %vm1269_vm12 = vweird.f32 %v2717_v32 }
 0x791   : > { %1570 = vmatpush.msra.mxu2 %v1490_v47 }
 0x793   : > { %v1258_v40 = vpop.xlane.xlu2 %1257 }
 0x794   : > { %v1260_v45 = vmul.f32 %v1258_v40, %v2563_v14  ;;  %v1480_v14 = vld [vmem:[#allocation13 + $0x58] sm:$0xff] }
 0x795   : > { %1541 = vmatpush.msrb.mxu1 %v1480_v14  ;;  %v1472_v40 = vld [vmem:[#allocation13 + $0x18] sm:$0xff] }
 0x796   : > { %v2721_v51 = vpop.eup %2020  ;;  %v2723_v52 = vadd.f32 1e-05, %v1260_v45  ;;  %v1504_v14 = vld [vmem:[#allocation13 + $0x118] sm:$0xff] }
 0x797   : > { %v1264_v55 = vmul.f32 %v2721_v51, %v2717_v32  ;;  %1542 = vmatpush.msrb.mxu1 %v1479_v59  ;;  %vm1270_vm11 = vweird.f32 %v2721_v51  ;;  %v1507_v32 = vld [vmem:[#allocation13 + $0x130] sm:$0xff]  ;;  %v1502_v59 = vld [vmem:[#allocation13 + $0x108] sm:$0xff] }
 0x798   : > { %2022 = vrsqrt.f32 %v2723_v52  ;;  %vm1271_vm13 = vmor %vm1269_vm12, %vm1270_vm11  ;;  %vm1279_vm15 = vweird.f32 %v2723_v52  ;;  %1592 = vmatpush.msra.mxu3 %v1507_v32 }
 0x799   : > { %v1265_v58 = vmul.f32 %v2721_v51, %v1264_v55  ;;  %1543 = vmatpush.msrb.mxu1 %v1478_v49  ;;  %v1488_v55 = vld [vmem:[#allocation13 + $0x98] sm:$0xff]  ;;  %v1364_v49 = vperm.slane %v1359_v62, 3 }
 0x79a   : > { %1593 = vmatpush.msra.mxu3 %v1506_v48 }
 0x79b   : > { %v1266_v63 = vmul.f32 0.5, %v1265_v58  ;;  %1544 = vmatpush.msrb.mxu1 %v1477_v6  ;;  %v1486_v58 = vld [vmem:[#allocation13 + $0x88] sm:$0xff] }
 0x79d   : > { %v1267_v5 = vsub.f32 1.5, %v1266_v63  ;;  %1545 = vmatpush.msrb.mxu1 %v1476_v13  ;;  %v1361_v63 = vperm.slane %v1359_v62, 0 }
 0x79e   : > { %v2023_v8 = vpop.eup %2022 }
 0x79f   : > { %v1268_v11 = vmul.f32 %v2721_v51, %v1267_v5  ;;  %v1274_v34 = vmul.f32 %v2023_v8, %v2723_v52  ;;  %1546 = vmatpush.msrb.mxu1 %v1475_v22  ;;  %vm1280_vm14 = vweird.f32 %v2023_v8  ;;  %v1505_v52 = vld [vmem:[#allocation13 + $0x120] sm:$0xff] }
 0x7a0   : > { %vm1281_vm0 = vmor %vm1279_vm15, %vm1280_vm14  ;;  %1594 = vmatpush.msra.mxu3 %v1505_v52 }
 0x7a1   : > { %v1272_v19 = vsel %vm1271_vm13, %v2721_v51, %v1268_v11  ;;  %v1275_v20 = vmul.f32 %v2023_v8, %v1274_v34  ;;  %1547 = vmatpush.msrb.mxu1 %v1474_v26  ;;  %v1470_v51 = vld [vmem:[#allocation13 + $0x8] sm:$0xff] }
 0x7a2   : > { %v1283_v23 = vmul.f32 %v1272_v19, %v2706_v27  ;;  %1595 = vmatpush.msra.mxu3 %v1504_v14 }
 0x7a3   : > { %v1276_v1 = vmul.f32 0.5, %v1275_v20  ;;  %1548 = vmatpush.msrb.mxu1 %v1473_v35 }
 0x7a4   : > { %v1288_v29 = vmul.f32 %v1979_v21, %v1283_v23  ;;  %1596 = vmatpush.msra.mxu3 %v1503_v44 }
 0x7a5   : > { %v1277_v17 = vsub.f32 1.5, %v1276_v1  ;;  %1549 = vmatpush.msrb.mxu1 %v1472_v40 }
 0x7a6   : > { %v1293_v27 = vadd.f32 %v1980_v0, %v1288_v29  ;;  %1597 = vmatpush.msra.mxu3 %v1502_v59  ;;  %v1981_v29 = vld [vmem:[%s2796_s11] ss:$0 sm:$0xff] }
 0x7a7   : > { %v1278_v33 = vmul.f32 %v2023_v8, %v1277_v17  ;;  %1550 = vmatpush.msrb.mxu1 %v1471_v46 }
 0x7a8   : > { %1385 = vmatmul.f32.vlgmr.msra.gmra.mxu1 %v1293_v27  ;;  %1408 = vmatmul.f32.vlgmr.msrb.gmra.mxu2 %v1293_v27 }
 0x7a9   : > { %v1282_v39 = vsel %vm1281_vm0, %v2023_v8, %v1278_v33  ;;  %1431 = vmatmul.f32.vlgmr.msrb.gmra.mxu3 %v1293_v27  ;;  %1454 = vmatmul.f32.vlgmr.msra.gmra.mxu0 %v1293_v27 }
 0x7aa   : > { %v1284_v42 = vmul.f32 %v1282_v39, %v2712_v31  ;;  %v1489_v31 = vld [vmem:[#allocation13 + $0xa0] sm:$0xff]  ;;  %1551 = vmatpush.msrb.mxu1 %v1470_v51  ;;  %1598 = vmatpush.msra.mxu3 %v1501_v61 }
 0x7ab   : > { %1571 = vmatpush.msra.mxu2 %v1489_v31 }
 0x7ac   : > { %v1289_v43 = vmul.f32 %v1979_v21, %v1284_v42  ;;  %1552 = vmatpush.msrb.mxu1 %v1469_v54 }
 0x7ad   : > { %1572 = vmatpush.msra.mxu2 %v1488_v55 }
 0x7ae   : > { %v1294_v45 = vadd.f32 %v1980_v0, %v1289_v43 }
 0x7af   : > { %1573 = vmatpush.msra.mxu2 %v1487_v57 }
 0x7b0   : > { %1388 = vmatmul.f32.gmra.mxu1 %v1294_v45  ;;  %1411 = vmatmul.f32.gmra.mxu2 %v1294_v45 }
 0x7b1   : > { %1434 = vmatmul.f32.gmra.mxu3 %v1294_v45  ;;  %1457 = vmatmul.f32.gmra.mxu0 %v1294_v45 }
 0x7b2   : > { %1574 = vmatpush.msra.mxu2 %v1486_v58 }
 0x7b4   : > { %1575 = vmatpush.msra.mxu2 %v1485_v60 }
 0x825   : > { %v1386_v2 = vpop.f32.mrf.mxu1 }
 0x826   : > { %v1387_v3 = vadd.f32 %v1386_v2, %v1361_v63  ;;  %v1455_v4 = vpop.f32.mrf.mxu0 }
 0x827   : > { %v1456_v5 = vadd.f32 %v1455_v4, %v1364_v49 }
 0x828   : > { %v1461_v6 = vmax.f32 %v1387_v3, 0.0 }
 0x829   : > { %v1464_v8 = vmax.f32 %v1456_v5, 0.0 }
 0x82a   : > { %1553 = vmatmul.f32.vlgmr.msrb.gmra.mxu1 %v1461_v6 }
 0x82b   : > { %1622 = vmatmul.f32.vlgmr.msrb.gmra.mxu0 %v1464_v8  ;;  %v1409_v10 = vpop.f32.mrf.mxu2 }
 0x82c   : > { %v1410_v11 = vadd.f32 %v1409_v10, %v1362_v7  ;;  %v1432_v34 = vpop.f32.mrf.mxu3 }
 0x82d   : > { %v1433_v21 = vadd.f32 %v1432_v34, %v1363_v9  ;;  %v1389_v13 = vpop.f32.mrf.mxu1 }
 0x82e   : > { %v1462_v15 = vmax.f32 %v1410_v11, 0.0  ;;  %v1390_v16 = vadd.f32 %v1389_v13, %v1361_v63  ;;  %v1458_v37 = vpop.f32.mrf.mxu0 }
 0x82f   : > { %v1463_v19 = vmax.f32 %v1433_v21, 0.0  ;;  %v1459_v20 = vadd.f32 %v1458_v37, %v1364_v49 }
 0x830   : > { %v1465_v22 = vmax.f32 %v1390_v16, 0.0  ;;  %1576 = vmatmul.f32.vlgmr.msra.gmra.mxu2 %v1462_v15 }
 0x831   : > { %v1468_v38 = vmax.f32 %v1459_v20, 0.0  ;;  %1599 = vmatmul.f32.vlgmr.msra.gmra.mxu3 %v1463_v19 }
 0x832   : > { %1556 = vmatmul.f32.gmra.mxu1 %v1465_v22 }
 0x833   : > { %1625 = vmatmul.f32.gmra.mxu0 %v1468_v38  ;;  %v1412_v23 = vpop.f32.mrf.mxu2 }
 0x834   : > { %v1413_v0 = vadd.f32 %v1412_v23, %v1362_v7  ;;  %v1435_v24 = vpop.f32.mrf.mxu3 }
 0x835   : > { %v1436_v25 = vadd.f32 %v1435_v24, %v1363_v9 }
 0x836   : > { %v1466_v1 = vmax.f32 %v1413_v0, 0.0 }
 0x837   : > { %v1467_v26 = vmax.f32 %v1436_v25, 0.0 }
 0x838   : > { %1579 = vmatmul.f32.gmra.mxu2 %v1466_v1 }
 0x839   : > { %1602 = vmatmul.f32.gmra.mxu3 %v1467_v26 }
 0x8a7   : > { %v1554_v28 = vpop.f32.mrf.mxu1 }
 0x8a8   : > { %v1555_v30 = vadd.f32 %v1981_v29, %v1554_v28  ;;  %v1623_v33 = vpop.f32.mrf.mxu0 }
 0x8af   : > { %v1557_v36 = vpop.f32.mrf.mxu1 }
 0x8b0   : > { %v1558_v40 = vadd.f32 %v1981_v29, %v1557_v36  ;;  %v1626_v47 = vpop.f32.mrf.mxu0 }
 0x8b3   : > { %v1577_v32 = vpop.f32.mrf.mxu2 }
 0x8b4   : > { %v1578_v17 = vadd.f32 %v1577_v32, %v1555_v30  ;;  %v1600_v27 = vpop.f32.mrf.mxu3 }
 0x8b6   : > { %v1601_v35 = vadd.f32 %v1600_v27, %v1578_v17 }
 0x8b8   : > { %v1624_v39 = vadd.f32 %v1623_v33, %v1601_v35 }
 0x8ba   : > { %v1629_v41 = vadd.f32 %v1624_v39, %v2697_v12 }
 0x8bb   : > { %v1580_v42 = vpop.f32.mrf.mxu2 }
 0x8bc   : > { %1631 = vst [vmem:[%s528_s1] sm:$0xff] %v1629_v41  ;;  %v1581_v43 = vadd.f32 %v1580_v42, %v1558_v40  ;;  %v1603_v45 = vpop.f32.mrf.mxu3 }
 0x8be   : > { %v1604_v46 = vadd.f32 %v1603_v45, %v1581_v43 }
 0x8c0   : > { %v1627_v48 = vadd.f32 %v1626_v47, %v1604_v46 }
 0x8c2   : > { %v1630_v12 = vadd.f32 %v1627_v48, %v2701_v18 }
 0x8c4   : > { %1632 = vst [vmem:[%s528_s1 + $0x8] sm:$0xff] %v1630_v12 }
 0x8c5   : > { %2261 = shalt.err (!%p2258_p9)
}
 0x8c6   : > { %s2331_s4 = smov 128   ;;  %s2332_s16 = smov 8  }
 0x8c7   : > { %1867 = dma.vmem_to_hbm [thread:$0]  (%p2501_p5), %s1647_s26, 256, %s1649_s20, %s1634_s28, %s2331_s4, %s2331_s4, %s2332_s16  }
 0x8c8 PF: > { %s1663_s3 = sand.u32 1, %s2300_s21   ;;  %p2824_p10 = scmp.ge.s32.totalorder %s2312_s24, 2 }
 0x8c9   : > { %s1664_s7 = scalar_lea.sflag [#allocation4], %s1663_s3 }
 0x8ca   : > { %p1893_p13 = pnand %p2824_p10, %p2505_p6 }
 0x8cc   : > { %p1894_p11 = pneg %p1893_p13 }
 0x8ce   : > { %2295 = dma.done.wait (%p1894_p11), %s1664_s7, 256  }
 0x8cf   : > { %2297 = vsyncadd (%p1894_p11), %s1664_s7, 4294967040  ;;  %p28_p0 = scmp.ge.s32.totalorder %s2475_s30, 4   ;;  %s2825_s21 = smov %s2304_s22 }
 0x8d0   : > { %s2826_s22 = smov %s2308_s23  ;;  %s2827_s23 = smov %s2486_s18 }
 0x8d1   : > { %s2828_s24 = smov %s2475_s30  ;;  %30 = sbr.rel (!%p28_p0) target bundleno = 16 (0x10), region = 140 }
 0x8d6   :  { %1670 = vsyncpa [#allocation3], 1 }
 0x8d7   :  { %1672 = vsyncpa [#allocation3 + $0x1], 1 }
 0x8d8   :  { %1673 = vsyncpa [#allocation6], 1 }
 0x8d9   :  { %1674 = vsyncpa [#allocation9], 1 }
 0x8da   :  { %1675 = vsyncpa [#allocation12], 1 }
 0x8db   :  { %1676 = vsyncpa [#allocation4], 1 }
 0x8dc   :  { %1678 = vsyncpa [#allocation4 + $0x1], 1 }

</bundles_post_ra>
